<compile_context>
chip_gen: v6e
topology: v6e:2x2x1
jax: 0.10.0
libtpu: 0.0.40
codegen_flags: <defaults>
</compile_context>

<pallas_src>
import functools

import jax
import jax.numpy as jnp
from jax.experimental import pallas as pl
from jax.experimental.pallas import tpu as pltpu


# ----------------------------------------------------------------------------
# In-kernel helpers
# ----------------------------------------------------------------------------
def _log_softmax(v):
    m = jnp.max(v, axis=-1, keepdims=True)
    return v - (m + jnp.log(jnp.sum(jnp.exp(v - m), axis=-1, keepdims=True)))


def _stats_kernel(x_ref, wica_ref, toe_ref, z_ref, sum_ref, sumsq_ref):
    """Pass 1: conv_ica + conv_time for a lane-packed batch block, z write-out,
    and single-pass BatchNorm statistics (sum, sum of squares)."""
    # conv_ica: (T, bn*C) @ block-diag (bn*C, bn*F) bf16 MXU matmul, f32 accum.
    y = jnp.dot(x_ref[0], wica_ref[...], preferred_element_type=jnp.float32)
    # conv_time: all K band-pass FIRs as ONE stacked-Toeplitz bf16 MXU matmul.
    z = jnp.dot(toe_ref[...], y.astype(jnp.bfloat16),
                preferred_element_type=jnp.float32)        # (K*Tp, bn*F) f32
    z_ref[0] = z
    # Per-lane (i.e. per sample x ICA filter) reductions over all (band, time) rows.
    sum_ref[0] = jnp.sum(z, axis=0, keepdims=True)
    sumsq_ref[0] = jnp.sum(z * z, axis=0, keepdims=True)


def _head_kernel(z_ref, scale_ref, shift_ref, pall_ref, wcls_ref,
                 out_x_ref, out_y_ref, *, K, TP_out, NCLS, bn):
    """Pass 2: folded BatchNorm affine, square, both poolings as one block-diag
    matmul, conv_class, per-sample log-softmax."""
    R = TP_out + 1
    z = z_ref[0]                                           # (K*Tp, bn*F)
    zb = z * scale_ref[...] + shift_ref[...]               # folded BN (per ICA filter)
    s = zb * zb                                            # torch.mul(x, x)
    # Both AvgPools (crop windows + full-time mean) for every band in one matmul;
    # rows are ordered k*R + p, p = TP_out is the full-time mean (poolmean2).
    pooled = jnp.dot(pall_ref[...], s, preferred_element_type=jnp.float32)
    # conv_class: contract (band k, ICA filter f); block-diagonal over the packed
    # batch lanes so the output columns are n*NCLS + c.
    u = jnp.dot(pooled[0:R, :], wcls_ref[0], preferred_element_type=jnp.float32)
    for k in range(1, K):
        u = u + jnp.dot(pooled[k * R:(k + 1) * R, :], wcls_ref[k],
                        preferred_element_type=jnp.float32)
    # Tiny per-sample tail: log-softmax over NCLS classes, then store.
    # NOTE: these stores are lane-sparse (NCLS wide) but negligible in size.
    for n in range(bn):
        v = _log_softmax(u[:, n * NCLS:(n + 1) * NCLS])    # (R, NCLS)
        out_x_ref[n] = v[:TP_out, :]                       # poolmean branch
        out_y_ref[n] = v[TP_out:, :]                       # poolmean2 branch


# ----------------------------------------------------------------------------
# Host-side constant construction
# ----------------------------------------------------------------------------
def _toeplitz_bank(w_time, T):
    """Banded Toeplitz matrices (K, Tp, T): z_k = Toe_k @ y (cross-correlation)."""
    K, ft = w_time.shape
    Tp = T - ft + 1
    d = jnp.arange(T)[None, :] - jnp.arange(Tp)[:, None]           # (Tp, T)
    taps = jnp.take(w_time, jnp.clip(d, 0, ft - 1), axis=1)        # (K, Tp, T)
    mask = ((d >= 0) & (d < ft))[None, :, :]
    return jnp.where(mask, taps, 0.0).astype(jnp.float32)


def _pool_matrix(Tp, pool_k, pool_s, TP_out):
    """AvgPool over time as a (TP_out, Tp) matrix."""
    start = jnp.arange(TP_out)[:, None] * pool_s
    t = jnp.arange(Tp)[None, :]
    m = (t >= start) & (t < start + pool_k)
    return m.astype(jnp.float32) / float(pool_k)


def init_params(key, in_chans, n_classes, n_filters_ica, filters, filters_time_size):
    K = len(filters)
    F = n_filters_ica
    k1, k2 = jax.random.split(key)

    # conv_ica: xavier_uniform on PyTorch weight (F, 1, 1, C); stored here as (C, F).
    bound_ica = (6.0 / (in_chans + F * in_chans)) ** 0.5
    w_ica = jax.random.uniform(k1, (F, in_chans), jnp.float32,
                               -bound_ica, bound_ica).T

    # conv_time taps.
    # TODO(synk): the reference builds taps with the undefined helper
    # `myfilter(fs=160, fl, fh, fliter_n, mode='N')`; this deterministic
    # Hamming-windowed difference-of-sinc band-pass stands in for it.
    def fir_bandpass(fs, fl, fh, n):
        m = jnp.arange(n, dtype=jnp.float32) - (n - 1) / 2.0

        def lp(fc):
            return 2.0 * fc / fs * jnp.sinc(2.0 * fc / fs * m)

        win = 0.54 - 0.46 * jnp.cos(
            2.0 * jnp.pi * jnp.arange(n, dtype=jnp.float32) / (n - 1))
        return (lp(fh) - lp(fl)) * win

    w_time = jnp.stack([fir_bandpass(160.0, fl, fh, filters_time_size)
                        for fl, fh in filters]).astype(jnp.float32)     # (K, ft)

    # batch1 = BatchNorm2d(n_filters_ica): affine params are per ICA filter (F,).
    gamma = jnp.ones((F,), jnp.float32)
    beta = jnp.zeros((F,), jnp.float32)

    # conv_class: xavier_uniform on PyTorch weight (NCLS, K, 1, F); stored (K, F, NCLS).
    bound_c = (6.0 / (K * F + n_classes * F)) ** 0.5
    w_class_pt = jax.random.uniform(k2, (n_classes, K, F), jnp.float32,
                                    -bound_c, bound_c)
    w_class = jnp.transpose(w_class_pt, (1, 2, 0))

    return dict(w_ica=w_ica, w_time=w_time, gamma=gamma, beta=beta,
                w_class=w_class)


# ----------------------------------------------------------------------------
# Forward pass
# ----------------------------------------------------------------------------
@functools.partial(jax.jit, static_argnames=("input_time_length", "crop_length",
                                             "filters_time_size", "poolmax_stride",
                                             "bn_eps", "batch_block", "lane_target"))
def ica_erdsnet_forward(x, params, *, input_time_length, crop_length,
                        filters_time_size, poolmax_stride, bn_eps=1e-5,
                        batch_block=64, lane_target=256):
    # x: PyTorch-style (N, in_chans, T, 1)
    N, C, T, one = x.shape
    assert one == 1 and T == input_time_length
    ft = filters_time_size
    Tp = T - ft + 1
    pool_k = crop_length - ft + 1
    pool_s = poolmax_stride
    TP_out = (Tp - pool_k) // pool_s + 1

    w_time = params["w_time"]                          # (K, ft)
    gamma, beta = params["gamma"], params["beta"]      # (F,)
    w_class = params["w_class"]                        # (K, F, NCLS)
    K, F, NCLS = w_class.shape
    R = TP_out + 1

    # ---- batch-block (lane-packing) selection --------------------------------
    # Pack bn samples into the lane dimension (bn*F output lanes; target 256 for
    # v6e/v7x MXUs), but cap at N//2 so nb >= 2: both v7x TensorCores get work
    # and the HBM->VMEM pipeline has something to double-buffer.
    limit = min(batch_block, max(1, lane_target // F))
    if N > 1:
        limit = min(limit, N // 2)
    limit = max(1, min(limit, N))
    bn = 1
    for d in range(1, limit + 1):
        if N % d == 0:
            bn = d
    nb = N // bn

    # ---- host-side constants --------------------------------------------------
    # x -> (nb, T, bn*C), column = n_local*C + c, bf16 for the MXU.
    x_k = jnp.transpose(x[..., 0], (0, 2, 1))                       # (N, T, C)
    x_k = (x_k.reshape(nb, bn, T, C).transpose(0, 2, 1, 3)
              .reshape(nb, T, bn * C).astype(jnp.bfloat16))

    eye_bn = jnp.eye(bn, dtype=jnp.float32)
    # Block-diagonal conv_ica weight: (bn*C, bn*F), column = n_local*F + f.
    w_ica_big = jnp.kron(eye_bn, params["w_ica"]).astype(jnp.bfloat16)
    # All K band-pass FIRs stacked: (K*Tp, T), row = k*Tp + t, bf16.
    toe = _toeplitz_bank(w_time, T).reshape(K * Tp, T).astype(jnp.bfloat16)
    # Pooling for both branches, block-diagonal over bands: (K*R, K*Tp), f32.
    pool_mat = _pool_matrix(Tp, pool_k, pool_s, TP_out)             # (TP_out, Tp)
    p_small = jnp.concatenate(
        [pool_mat, jnp.full((1, Tp), 1.0 / Tp, jnp.float32)], axis=0)   # (R, Tp)
    p_all = jnp.kron(jnp.eye(K, dtype=jnp.float32), p_small)        # (K*R, K*Tp)
    # conv_class, block-diagonal over the packed batch: (K, bn*F, bn*NCLS), f32
    # (kept f32 for precision; this matmul is tiny).
    wcls_big = jnp.einsum("nm,kfc->knfmc", eye_bn, w_class).reshape(
        K, bn * F, bn * NCLS)

    cparams = pltpu.CompilerParams(
        dimension_semantics=("parallel",),
        vmem_limit_bytes=32 * 1024 * 1024)   # comfortably under v7x's 64 MiB VMEM

    def full(*shape):
        return pl.BlockSpec(shape, lambda i, _n=len(shape): (0,) * _n)

    def batched(*shape):
        return pl.BlockSpec(shape, lambda i, _n=len(shape): (i,) + (0,) * (_n - 1))

    # ---- pass 1: conv_ica + conv_time, z write-out, BN batch statistics --------
    z_all, psum, psumsq = pl.pallas_call(
        _stats_kernel,
        grid=(nb,),
        in_specs=[batched(1, T, bn * C), full(bn * C, bn * F), full(K * Tp, T)],
        out_specs=(batched(1, K * Tp, bn * F),
                   batched(1, 1, bn * F),
                   batched(1, 1, bn * F)),
        out_shape=(jax.ShapeDtypeStruct((nb, K * Tp, bn * F), jnp.float32),
                   jax.ShapeDtypeStruct((nb, 1, bn * F), jnp.float32),
                   jax.ShapeDtypeStruct((nb, 1, bn * F), jnp.float32)),
        compiler_params=cparams,
    )(x_k, w_ica_big, toe)

    # Fold BN (training-mode batch stats, biased variance) into one affine.
    # Single-pass E[x^2]-E[x]^2 (band-passed signals are ~zero-mean); clamp round-off.
    # TODO(synk): inference-mode parity (running statistics) is not implemented.
    count = float(N * K * Tp)
    total = jnp.sum(psum.reshape(nb * bn, F), axis=0)                # (F,)
    total_sq = jnp.sum(psumsq.reshape(nb * bn, F), axis=0)           # (F,)
    mean = total / count
    var = jnp.maximum(total_sq / count - mean * mean, 0.0)
    scale = gamma * jax.lax.rsqrt(var + bn_eps)                      # (F,)
    shift = beta - mean * scale
    scale_big = jnp.tile(scale, bn).reshape(1, bn * F)               # lane = n*F + f
    shift_big = jnp.tile(shift, bn).reshape(1, bn * F)

    # ---- pass 2: normalize, square, pool, classify, log-softmax ----------------
    out_x, out_y = pl.pallas_call(
        functools.partial(_head_kernel, K=K, TP_out=TP_out, NCLS=NCLS, bn=bn),
        grid=(nb,),
        in_specs=[batched(1, K * Tp, bn * F), full(1, bn * F), full(1, bn * F),
                  full(K * R, K * Tp), full(K, bn * F, bn * NCLS)],
        out_specs=(batched(bn, TP_out, NCLS),
                   batched(bn, 1, NCLS)),
        out_shape=(jax.ShapeDtypeStruct((N, TP_out, NCLS), jnp.float32),
                   jax.ShapeDtypeStruct((N, 1, NCLS), jnp.float32)),
        compiler_params=cparams,
    )(z_all, scale_big, shift_big, p_all, wcls_big)

    # Back to PyTorch ordering (N, n_classes, pooled_time), then squeeze.
    x_out = jnp.squeeze(jnp.transpose(out_x, (0, 2, 1)))
    y_out = jnp.squeeze(jnp.transpose(out_y, (0, 2, 1)))
    return x_out, y_out, 0


if __name__ == "__main__":
    # Small, self-consistent configuration (N=4 exercises the lane-packing path:
    # bn=2 samples per grid step, nb=2 grid steps).
    N = 4
    in_chans = 8
    n_classes = 4
    input_time_length = 96
    crop_length = 96
    n_filters_ica = 16
    filters = [(8.0, 12.0), (12.0, 16.0), (16.0, 24.0), (24.0, 30.0)]  # K = 4
    filters_time_size = 11
    poolmax_stride = 16

    key = jax.random.PRNGKey(0)
    kx, kp = jax.random.split(key)
    params = init_params(kp, in_chans, n_classes, n_filters_ica, filters,
                         filters_time_size)
    x = jax.random.normal(kx, (N, in_chans, input_time_length, 1), jnp.float32)

    x_out, y_out, _ = ica_erdsnet_forward(
        x, params, input_time_length=input_time_length,
        crop_length=crop_length, filters_time_size=filters_time_size,
        poolmax_stride=poolmax_stride)
    jax.block_until_ready((x_out, y_out))

    assert x_out.shape == (N, n_classes), x_out.shape
    assert y_out.shape == (N, n_classes), y_out.shape
    # log-softmax rows must exponentiate-sum to 1
    assert bool(jnp.allclose(jnp.exp(x_out).sum(-1), 1.0, atol=1e-4))
    assert bool(jnp.allclose(jnp.exp(y_out).sum(-1), 1.0, atol=1e-4))
    print("KERNEL_OK")
</pallas_src>

<mosaic_0001>
module attributes {stable_mosaic.version = 11 : i64} {
  func.func @_stats_kernel(%arg0: i32, %arg1: memref<1x96x16xbf16, #tpu.memory_space<vmem>>, %arg2: memref<16x32xbf16, #tpu.memory_space<vmem>>, %arg3: memref<344x96xbf16, #tpu.memory_space<vmem>>, %arg4: memref<1x344x32xf32, #tpu.memory_space<vmem>>, %arg5: memref<1x1x32xf32, #tpu.memory_space<vmem>>, %arg6: memref<1x1x32xf32, #tpu.memory_space<vmem>>) attributes {dimension_semantics = [#tpu.dimension_semantics<parallel>], iteration_bounds = array<i64: 2>, scalar_prefetch = 0 : i64, scratch_operands = 0 : i64, tpu.core_type = #tpu.core_type<tc>, window_params = [{transform_indices = @transform_0, window_bounds = array<i64: 1, 96, 16>}, {pipeline_mode = #tpu.pipeline_mode<synchronous>, transform_indices = @transform_1, window_bounds = array<i64: 16, 32>}, {pipeline_mode = #tpu.pipeline_mode<synchronous>, transform_indices = @transform_2, window_bounds = array<i64: 344, 96>}, {transform_indices = @transform_3, window_bounds = array<i64: 1, 344, 32>}, {transform_indices = @transform_4, window_bounds = array<i64: 1, 1, 32>}, {transform_indices = @transform_5, window_bounds = array<i64: 1, 1, 32>}]} {
    %c0 = arith.constant 0 : index
    %c0_0 = arith.constant 0 : index
    %c0_1 = arith.constant 0 : index
    %0 = vector.load %arg1[%c0, %c0_0, %c0_1] : memref<1x96x16xbf16, #tpu.memory_space<vmem>>, vector<1x96x16xbf16>
    %1 = vector.shape_cast %0 : vector<1x96x16xbf16> to vector<96x16xbf16>
    %c0_2 = arith.constant 0 : index
    %c0_3 = arith.constant 0 : index
    %2 = vector.load %arg2[%c0_2, %c0_3] : memref<16x32xbf16, #tpu.memory_space<vmem>>, vector<16x32xbf16>
    %cst = arith.constant dense<0.000000e+00> : vector<96x32xf32>
    %3 = tpu.matmul %1, %2, %cst {dimension_numbers = #tpu.dot_dimension_numbers<[1], [0], [0], [1], [0, 0, 1, 1], [], []>} : vector<96x16xbf16>, vector<16x32xbf16>, vector<96x32xf32> -> vector<96x32xf32>
    %c0_4 = arith.constant 0 : index
    %c0_5 = arith.constant 0 : index
    %4 = vector.load %arg3[%c0_4, %c0_5] : memref<344x96xbf16, #tpu.memory_space<vmem>>, vector<344x96xbf16>
    %5 = arith.truncf %3 : vector<96x32xf32> to vector<96x32xbf16>
    %cst_6 = arith.constant dense<0.000000e+00> : vector<344x32xf32>
    %6 = tpu.matmul %4, %5, %cst_6 {dimension_numbers = #tpu.dot_dimension_numbers<[1], [0], [0], [1], [0, 0, 1, 1], [], []>} : vector<344x96xbf16>, vector<96x32xbf16>, vector<344x32xf32> -> vector<344x32xf32>
    %c0_7 = arith.constant 0 : index
    %c0_8 = arith.constant 0 : index
    %c0_9 = arith.constant 0 : index
    %7 = vector.load %arg4[%c0_7, %c0_8, %c0_9] : memref<1x344x32xf32, #tpu.memory_space<vmem>>, vector<1x344x32xf32>
    %8 = vector.shape_cast %7 : vector<1x344x32xf32> to vector<344x32xf32>
    %9 = vector.shape_cast %6 : vector<344x32xf32> to vector<1x344x32xf32>
    tpu.vector_store %arg4[%c0_7, %c0_8, %c0_9], %9 {strides = array<i32>} : memref<1x344x32xf32, #tpu.memory_space<vmem>>, vector<1x344x32xf32>,
    %cst_10 = arith.constant dense<0.000000e+00> : vector<32xf32>
    %10 = vector.multi_reduction <add>, %6, %cst_10 [0] : vector<344x32xf32> to vector<32xf32>
    %11 = vector.shape_cast %10 : vector<32xf32> to vector<1x32xf32>
    %c0_11 = arith.constant 0 : index
    %c0_12 = arith.constant 0 : index
    %c0_13 = arith.constant 0 : index
    %12 = vector.load %arg5[%c0_11, %c0_12, %c0_13] : memref<1x1x32xf32, #tpu.memory_space<vmem>>, vector<1x1x32xf32>
    %13 = vector.shape_cast %12 : vector<1x1x32xf32> to vector<1x32xf32>
    %14 = vector.shape_cast %11 : vector<1x32xf32> to vector<1x1x32xf32>
    tpu.vector_store %arg5[%c0_11, %c0_12, %c0_13], %14 {strides = array<i32>} : memref<1x1x32xf32, #tpu.memory_space<vmem>>, vector<1x1x32xf32>,
    %15 = arith.mulf %6, %6 : vector<344x32xf32>
    %cst_14 = arith.constant dense<0.000000e+00> : vector<32xf32>
    %16 = vector.multi_reduction <add>, %15, %cst_14 [0] : vector<344x32xf32> to vector<32xf32>
    %17 = vector.shape_cast %16 : vector<32xf32> to vector<1x32xf32>
    %c0_15 = arith.constant 0 : index
    %c0_16 = arith.constant 0 : index
    %c0_17 = arith.constant 0 : index
    %18 = vector.load %arg6[%c0_15, %c0_16, %c0_17] : memref<1x1x32xf32, #tpu.memory_space<vmem>>, vector<1x1x32xf32>
    %19 = vector.shape_cast %18 : vector<1x1x32xf32> to vector<1x32xf32>
    %20 = vector.shape_cast %17 : vector<1x32xf32> to vector<1x1x32xf32>
    tpu.vector_store %arg6[%c0_15, %c0_16, %c0_17], %20 {strides = array<i32>} : memref<1x1x32xf32, #tpu.memory_space<vmem>>, vector<1x1x32xf32>,
    return
  }
  func.func @transform_0(%arg0: i32) -> (i32, i32, i32) {
    %c0_i32 = arith.constant 0 : i32
    %c0_i32_0 = arith.constant 0 : i32
    %c0_i32_1 = arith.constant 0 : i32
    return %arg0, %c0_i32, %c0_i32_0 : i32, i32, i32
  }
  func.func @transform_1(%arg0: i32) -> (i32, i32) {
    %c0_i32 = arith.constant 0 : i32
    %c0_i32_0 = arith.constant 0 : i32
    %c0_i32_1 = arith.constant 0 : i32
    return %c0_i32, %c0_i32_0 : i32, i32
  }
  func.func @transform_2(%arg0: i32) -> (i32, i32) {
    %c0_i32 = arith.constant 0 : i32
    %c0_i32_0 = arith.constant 0 : i32
    %c0_i32_1 = arith.constant 0 : i32
    return %c0_i32, %c0_i32_0 : i32, i32
  }
  func.func @transform_3(%arg0: i32) -> (i32, i32, i32) {
    %c0_i32 = arith.constant 0 : i32
    %c0_i32_0 = arith.constant 0 : i32
    %c0_i32_1 = arith.constant 0 : i32
    return %arg0, %c0_i32, %c0_i32_0 : i32, i32, i32
  }
  func.func @transform_4(%arg0: i32) -> (i32, i32, i32) {
    %c0_i32 = arith.constant 0 : i32
    %c0_i32_0 = arith.constant 0 : i32
    %c0_i32_1 = arith.constant 0 : i32
    return %arg0, %c0_i32, %c0_i32_0 : i32, i32, i32
  }
  func.func @transform_5(%arg0: i32) -> (i32, i32, i32) {
    %c0_i32 = arith.constant 0 : i32
    %c0_i32_0 = arith.constant 0 : i32
    %c0_i32_1 = arith.constant 0 : i32
    return %arg0, %c0_i32, %c0_i32_0 : i32, i32, i32
  }
}

module attributes {stable_mosaic.version = 11 : i64} {
  func.func @_head_kernel(%arg0: i32, %arg1: memref<1x344x32xf32, #tpu.memory_space<vmem>>, %arg2: memref<1x32xf32, #tpu.memory_space<vmem>>, %arg3: memref<1x32xf32, #tpu.memory_space<vmem>>, %arg4: memref<8x344xf32, #tpu.memory_space<vmem>>, %arg5: memref<4x32x8xf32, #tpu.memory_space<vmem>>, %arg6: memref<2x1x4xf32, #tpu.memory_space<vmem>>, %arg7: memref<2x1x4xf32, #tpu.memory_space<vmem>>) attributes {dimension_semantics = [#tpu.dimension_semantics<parallel>], iteration_bounds = array<i64: 2>, scalar_prefetch = 0 : i64, scratch_operands = 0 : i64, tpu.core_type = #tpu.core_type<tc>, window_params = [{transform_indices = @transform_0, window_bounds = array<i64: 1, 344, 32>}, {pipeline_mode = #tpu.pipeline_mode<synchronous>, transform_indices = @transform_1, window_bounds = array<i64: 1, 32>}, {pipeline_mode = #tpu.pipeline_mode<synchronous>, transform_indices = @transform_2, window_bounds = array<i64: 1, 32>}, {pipeline_mode = #tpu.pipeline_mode<synchronous>, transform_indices = @transform_3, window_bounds = array<i64: 8, 344>}, {pipeline_mode = #tpu.pipeline_mode<synchronous>, transform_indices = @transform_4, window_bounds = array<i64: 4, 32, 8>}, {transform_indices = @transform_5, window_bounds = array<i64: 2, 1, 4>}, {transform_indices = @transform_6, window_bounds = array<i64: 2, 1, 4>}]} {
    %c0 = arith.constant 0 : index
    %c0_0 = arith.constant 0 : index
    %c0_1 = arith.constant 0 : index
    %0 = vector.load %arg1[%c0, %c0_0, %c0_1] : memref<1x344x32xf32, #tpu.memory_space<vmem>>, vector<1x344x32xf32>
    %1 = vector.shape_cast %0 : vector<1x344x32xf32> to vector<344x32xf32>
    %c0_2 = arith.constant 0 : index
    %c0_3 = arith.constant 0 : index
    %2 = vector.load %arg2[%c0_2, %c0_3] : memref<1x32xf32, #tpu.memory_space<vmem>>, vector<1x32xf32>
    %3 = vector.broadcast %2 : vector<1x32xf32> to vector<344x32xf32>
    %4 = arith.mulf %1, %3 : vector<344x32xf32>
    %c0_4 = arith.constant 0 : index
    %c0_5 = arith.constant 0 : index
    %5 = vector.load %arg3[%c0_4, %c0_5] : memref<1x32xf32, #tpu.memory_space<vmem>>, vector<1x32xf32>
    %6 = vector.broadcast %5 : vector<1x32xf32> to vector<344x32xf32>
    %7 = arith.addf %4, %6 : vector<344x32xf32>
    %8 = arith.mulf %7, %7 : vector<344x32xf32>
    %c0_6 = arith.constant 0 : index
    %c0_7 = arith.constant 0 : index
    %9 = vector.load %arg4[%c0_6, %c0_7] : memref<8x344xf32, #tpu.memory_space<vmem>>, vector<8x344xf32>
    %cst = arith.constant dense<0.000000e+00> : vector<8x32xf32>
    %10 = tpu.matmul %9, %8, %cst {dimension_numbers = #tpu.dot_dimension_numbers<[1], [0], [0], [1], [0, 0, 1, 1], [], []>} : vector<8x344xf32>, vector<344x32xf32>, vector<8x32xf32> -> vector<8x32xf32>
    %11 = vector.extract_strided_slice %10 {offsets = [0, 0], sizes = [2, 32], strides = [1, 1]} : vector<8x32xf32> to vector<2x32xf32>
    %c0_8 = arith.constant 0 : index
    %c0_9 = arith.constant 0 : index
    %c0_10 = arith.constant 0 : index
    %12 = vector.load %arg5[%c0_8, %c0_9, %c0_10] : memref<4x32x8xf32, #tpu.memory_space<vmem>>, vector<1x32x8xf32>
    %13 = vector.shape_cast %12 : vector<1x32x8xf32> to vector<32x8xf32>
    %cst_11 = arith.constant dense<0.000000e+00> : vector<2x8xf32>
    %14 = tpu.matmul %11, %13, %cst_11 {dimension_numbers = #tpu.dot_dimension_numbers<[1], [0], [0], [1], [0, 0, 1, 1], [], []>} : vector<2x32xf32>, vector<32x8xf32>, vector<2x8xf32> -> vector<2x8xf32>
    %15 = vector.extract_strided_slice %10 {offsets = [2, 0], sizes = [2, 32], strides = [1, 1]} : vector<8x32xf32> to vector<2x32xf32>
    %c1 = arith.constant 1 : index
    %c0_12 = arith.constant 0 : index
    %c0_13 = arith.constant 0 : index
    %16 = vector.load %arg5[%c1, %c0_12, %c0_13] : memref<4x32x8xf32, #tpu.memory_space<vmem>>, vector<1x32x8xf32>
    %17 = vector.shape_cast %16 : vector<1x32x8xf32> to vector<32x8xf32>
    %cst_14 = arith.constant dense<0.000000e+00> : vector<2x8xf32>
    %18 = tpu.matmul %15, %17, %cst_14 {dimension_numbers = #tpu.dot_dimension_numbers<[1], [0], [0], [1], [0, 0, 1, 1], [], []>} : vector<2x32xf32>, vector<32x8xf32>, vector<2x8xf32> -> vector<2x8xf32>
    %19 = arith.addf %14, %18 : vector<2x8xf32>
    %20 = vector.extract_strided_slice %10 {offsets = [4, 0], sizes = [2, 32], strides = [1, 1]} : vector<8x32xf32> to vector<2x32xf32>
    %c2 = arith.constant 2 : index
    %c0_15 = arith.constant 0 : index
    %c0_16 = arith.constant 0 : index
    %21 = vector.load %arg5[%c2, %c0_15, %c0_16] : memref<4x32x8xf32, #tpu.memory_space<vmem>>, vector<1x32x8xf32>
    %22 = vector.shape_cast %21 : vector<1x32x8xf32> to vector<32x8xf32>
    %cst_17 = arith.constant dense<0.000000e+00> : vector<2x8xf32>
    %23 = tpu.matmul %20, %22, %cst_17 {dimension_numbers = #tpu.dot_dimension_numbers<[1], [0], [0], [1], [0, 0, 1, 1], [], []>} : vector<2x32xf32>, vector<32x8xf32>, vector<2x8xf32> -> vector<2x8xf32>
    %24 = arith.addf %19, %23 : vector<2x8xf32>
    %25 = vector.extract_strided_slice %10 {offsets = [6, 0], sizes = [2, 32], strides = [1, 1]} : vector<8x32xf32> to vector<2x32xf32>
    %c3 = arith.constant 3 : index
    %c0_18 = arith.constant 0 : index
    %c0_19 = arith.constant 0 : index
    %26 = vector.load %arg5[%c3, %c0_18, %c0_19] : memref<4x32x8xf32, #tpu.memory_space<vmem>>, vector<1x32x8xf32>
    %27 = vector.shape_cast %26 : vector<1x32x8xf32> to vector<32x8xf32>
    %cst_20 = arith.constant dense<0.000000e+00> : vector<2x8xf32>
    %28 = tpu.matmul %25, %27, %cst_20 {dimension_numbers = #tpu.dot_dimension_numbers<[1], [0], [0], [1], [0, 0, 1, 1], [], []>} : vector<2x32xf32>, vector<32x8xf32>, vector<2x8xf32> -> vector<2x8xf32>
    %29 = arith.addf %24, %28 : vector<2x8xf32>
    %30 = vector.extract_strided_slice %29 {offsets = [0, 0], sizes = [2, 4], strides = [1, 1]} : vector<2x8xf32> to vector<2x4xf32>
    %cst_21 = arith.constant dense<0xFF800000> : vector<2xf32>
    %31 = vector.multi_reduction <maximumf>, %30, %cst_21 [1] : vector<2x4xf32> to vector<2xf32>
    %32 = vector.shape_cast %31 : vector<2xf32> to vector<2x1xf32>
    %33 = vector.broadcast %32 : vector<2x1xf32> to vector<2x4xf32>
    %34 = arith.subf %30, %33 : vector<2x4xf32>
    %35 = math.exp %34 : vector<2x4xf32>
    %cst_22 = arith.constant dense<0.000000e+00> : vector<2xf32>
    %36 = vector.multi_reduction <add>, %35, %cst_22 [1] : vector<2x4xf32> to vector<2xf32>
    %37 = vector.shape_cast %36 : vector<2xf32> to vector<2x1xf32>
    %38 = math.log %37 : vector<2x1xf32>
    %39 = arith.addf %32, %38 : vector<2x1xf32>
    %40 = vector.broadcast %39 : vector<2x1xf32> to vector<2x4xf32>
    %41 = arith.subf %30, %40 : vector<2x4xf32>
    %42 = vector.extract_strided_slice %41 {offsets = [0, 0], sizes = [1, 4], strides = [1, 1]} : vector<2x4xf32> to vector<1x4xf32>
    %c0_23 = arith.constant 0 : index
    %c0_24 = arith.constant 0 : index
    %c0_25 = arith.constant 0 : index
    %43 = vector.load %arg6[%c0_23, %c0_24, %c0_25] : memref<2x1x4xf32, #tpu.memory_space<vmem>>, vector<1x1x4xf32>
    %44 = vector.shape_cast %43 : vector<1x1x4xf32> to vector<1x4xf32>
    %45 = vector.shape_cast %42 : vector<1x4xf32> to vector<1x1x4xf32>
    tpu.vector_store %arg6[%c0_23, %c0_24, %c0_25], %45 {strides = array<i32>} : memref<2x1x4xf32, #tpu.memory_space<vmem>>, vector<1x1x4xf32>,
    %46 = vector.extract_strided_slice %41 {offsets = [1, 0], sizes = [1, 4], strides = [1, 1]} : vector<2x4xf32> to vector<1x4xf32>
    %c0_26 = arith.constant 0 : index
    %c0_27 = arith.constant 0 : index
    %c0_28 = arith.constant 0 : index
    %47 = vector.load %arg7[%c0_26, %c0_27, %c0_28] : memref<2x1x4xf32, #tpu.memory_space<vmem>>, vector<1x1x4xf32>
    %48 = vector.shape_cast %47 : vector<1x1x4xf32> to vector<1x4xf32>
    %49 = vector.shape_cast %46 : vector<1x4xf32> to vector<1x1x4xf32>
    tpu.vector_store %arg7[%c0_26, %c0_27, %c0_28], %49 {strides = array<i32>} : memref<2x1x4xf32, #tpu.memory_space<vmem>>, vector<1x1x4xf32>,
    %50 = vector.extract_strided_slice %29 {offsets = [0, 4], sizes = [2, 4], strides = [1, 1]} : vector<2x8xf32> to vector<2x4xf32>
    %cst_29 = arith.constant dense<0xFF800000> : vector<2xf32>
    %51 = vector.multi_reduction <maximumf>, %50, %cst_29 [1] : vector<2x4xf32> to vector<2xf32>
    %52 = vector.shape_cast %51 : vector<2xf32> to vector<2x1xf32>
    %53 = vector.broadcast %52 : vector<2x1xf32> to vector<2x4xf32>
    %54 = arith.subf %50, %53 : vector<2x4xf32>
    %55 = math.exp %54 : vector<2x4xf32>
    %cst_30 = arith.constant dense<0.000000e+00> : vector<2xf32>
    %56 = vector.multi_reduction <add>, %55, %cst_30 [1] : vector<2x4xf32> to vector<2xf32>
    %57 = vector.shape_cast %56 : vector<2xf32> to vector<2x1xf32>
    %58 = math.log %57 : vector<2x1xf32>
    %59 = arith.addf %52, %58 : vector<2x1xf32>
    %60 = vector.broadcast %59 : vector<2x1xf32> to vector<2x4xf32>
    %61 = arith.subf %50, %60 : vector<2x4xf32>
    %62 = vector.extract_strided_slice %61 {offsets = [0, 0], sizes = [1, 4], strides = [1, 1]} : vector<2x4xf32> to vector<1x4xf32>
    %c1_31 = arith.constant 1 : index
    %c0_32 = arith.constant 0 : index
    %c0_33 = arith.constant 0 : index
    %63 = vector.load %arg6[%c1_31, %c0_32, %c0_33] : memref<2x1x4xf32, #tpu.memory_space<vmem>>, vector<1x1x4xf32>
    %64 = vector.shape_cast %63 : vector<1x1x4xf32> to vector<1x4xf32>
    %65 = vector.shape_cast %62 : vector<1x4xf32> to vector<1x1x4xf32>
    tpu.vector_store %arg6[%c1_31, %c0_32, %c0_33], %65 {strides = array<i32>} : memref<2x1x4xf32, #tpu.memory_space<vmem>>, vector<1x1x4xf32>,
    %66 = vector.extract_strided_slice %61 {offsets = [1, 0], sizes = [1, 4], strides = [1, 1]} : vector<2x4xf32> to vector<1x4xf32>
    %c1_34 = arith.constant 1 : index
    %c0_35 = arith.constant 0 : index
    %c0_36 = arith.constant 0 : index
    %67 = vector.load %arg7[%c1_34, %c0_35, %c0_36] : memref<2x1x4xf32, #tpu.memory_space<vmem>>, vector<1x1x4xf32>
    %68 = vector.shape_cast %67 : vector<1x1x4xf32> to vector<1x4xf32>
    %69 = vector.shape_cast %66 : vector<1x4xf32> to vector<1x1x4xf32>
    tpu.vector_store %arg7[%c1_34, %c0_35, %c0_36], %69 {strides = array<i32>} : memref<2x1x4xf32, #tpu.memory_space<vmem>>, vector<1x1x4xf32>,
    return
  }
  func.func @transform_0(%arg0: i32) -> (i32, i32, i32) {
    %c0_i32 = arith.constant 0 : i32
    %c0_i32_0 = arith.constant 0 : i32
    %c0_i32_1 = arith.constant 0 : i32
    return %arg0, %c0_i32, %c0_i32_0 : i32, i32, i32
  }
  func.func @transform_1(%arg0: i32) -> (i32, i32) {
    %c0_i32 = arith.constant 0 : i32
    %c0_i32_0 = arith.constant 0 : i32
    %c0_i32_1 = arith.constant 0 : i32
    return %c0_i32, %c0_i32_0 : i32, i32
  }
  func.func @transform_2(%arg0: i32) -> (i32, i32) {
    %c0_i32 = arith.constant 0 : i32
    %c0_i32_0 = arith.constant 0 : i32
    %c0_i32_1 = arith.constant 0 : i32
    return %c0_i32, %c0_i32_0 : i32, i32
  }
  func.func @transform_3(%arg0: i32) -> (i32, i32) {
    %c0_i32 = arith.constant 0 : i32
    %c0_i32_0 = arith.constant 0 : i32
    %c0_i32_1 = arith.constant 0 : i32
    return %c0_i32, %c0_i32_0 : i32, i32
  }
  func.func @transform_4(%arg0: i32) -> (i32, i32, i32) {
    %c0_i32 = arith.constant 0 : i32
    %c0_i32_0 = arith.constant 0 : i32
    %c0_i32_1 = arith.constant 0 : i32
    %c0_i32_2 = arith.constant 0 : i32
    return %c0_i32, %c0_i32_0, %c0_i32_1 : i32, i32, i32
  }
  func.func @transform_5(%arg0: i32) -> (i32, i32, i32) {
    %c0_i32 = arith.constant 0 : i32
    %c0_i32_0 = arith.constant 0 : i32
    %c0_i32_1 = arith.constant 0 : i32
    return %arg0, %c0_i32, %c0_i32_0 : i32, i32, i32
  }
  func.func @transform_6(%arg0: i32) -> (i32, i32, i32) {
    %c0_i32 = arith.constant 0 : i32
    %c0_i32_0 = arith.constant 0 : i32
    %c0_i32_1 = arith.constant 0 : i32
    return %arg0, %c0_i32, %c0_i32_0 : i32, i32, i32
  }
}

</mosaic_0001>

<bundles_post_ra>
// kernel: tile.13
= control target key start
LH: loop header
LB: loop body
LE: loop exit
PB: predicated region body
PF: predicated region fallthrough
CT: control target
= control target key end

     0   :  { %s22_s0 = inlined_call_operand.vmem [shape: f32[16], index: 0, kind: input, shape index: {}]   ;;  %s23_s1 = inlined_call_operand.vmem [shape: f32[2,16], index: 1, kind: output, shape index: {}]  }
   0x1   :  { %v4_v0 = vld [vmem:[%s22_s0] ss:$0 sm:$0xff] }
   0x2   :  { %5 = vst [vmem:[%s23_s1] sm:$0x3] %v4_v0 }

// kernel: tile.14
= control target key start
LH: loop header
LB: loop body
LE: loop exit
PB: predicated region body
PF: predicated region fallthrough
CT: control target
= control target key end

     0   :  { %vm8_vm0 = vcmask 130048   ;;  %vm14_vm1 = vcmask 261248   ;;  %s42_s0 = inlined_call_operand.vmem [shape: f32[2,16], index: 0, kind: input, shape index: {}]   ;;  %s43_s1 = inlined_call_operand.vmem [shape: f32[1,32], index: 1, kind: output, shape index: {}]  }
   0x1   :  { %v5_v0 = vld [vmem:[%s42_s0] sm:$0x3]  ;;  %s25_s0 = smov 16  }
   0x2   :  { %6 = vst [vmem:[#allocation1] sm:$0x3] %v5_v0 }
   0x9   :  { %v11_v1 = vld [vmem:[#allocation1 + $0x1] sm:$0x1]   ;;  %v7_v2 = vld [vmem:[#allocation1] sm:$0x1]  }
   0xa   :  { %12 = vrot.lane.b32.xlu0 %v11_v1, %s25_s0  ;;  %9 = vst.msk [vmem:[#allocation0] sm:$0x1] %vm8_vm0, %v7_v2  }
  0x7c   :  { %v13_v3 = vpop.permute.xlu0 %12  }
  0x7d   :  { %15 = vst.msk [vmem:[#allocation0] sm:$0x1] %vm14_vm1, %v13_v3  }
  0x84   :  { %v20_v4 = vld [vmem:[#allocation0] sm:$0x1] }
  0x85   :  { %23 = vst [vmem:[%s43_s1] sm:$0x1] %v20_v4 }

// kernel: ica_erdsnet_forward.2
= control target key start
LH: loop header
LB: loop body
LE: loop exit
PB: predicated region body
PF: predicated region fallthrough
CT: control target
= control target key end

     0   :  { %s1462_s18 = smov 0   ;;  %s1894_s0 = inlined_call_operand.vmem [shape: bf16[2,96,16], index: 0, kind: input, shape index: {}]   ;;  %s1895_s1 = inlined_call_operand.vmem [shape: bf16[16,32], index: 1, kind: input, shape index: {}]   ;;  %s1896_s2 = inlined_call_operand.vmem [shape: bf16[344,96], index: 2, kind: input, shape index: {}]   ;;  %s1897_s3 = inlined_call_operand.vmem [shape: f32[2,344,32], index: 3, kind: output, shape index: {0}]   ;;  %s1898_s4 = inlined_call_operand.vmem [shape: f32[2,1,32], index: 4, kind: output, shape index: {1}]   ;;  %s1899_s5 = inlined_call_operand.vmem [shape: f32[2,1,32], index: 5, kind: output, shape index: {2}]  }
   0x1 LB: > { %s1202_s19 = sadd.s32 4294967295, %s1430_s18   ;;  %p1206_p0 = scmp.ge.s32.totalorder %s1430_s18, 1  ;;  %s1430_s18 = sphi %s1462_s18, %s16_s18  }
   0x2   : > { %p192_p1 = scmp.lt.s32.totalorder %s1430_s18, 3 }
   0x4   : > { %p193_p2 = pnand %p1206_p0, %p192_p1 }
   0x5   : > { %p226_p3 = scmp.lt.s32.totalorder (!%p193_p2), %s1202_s19, 1 }
   0x6   : > { %196 = sbr.rel (%p193_p2) target bundleno = 555 (0x22b), region = 32 }
   0xb   : > { %v1395_v0 = vld [vmem:[%s1895_s1] sm:$0xff]   ;;  %s1901_s19 = smov (!%p226_p3, %s1202_s19), 1  ;;  %vm293_vm0 = vcmask 130048   ;;  %vm550_vm1 = vcmask 785408   ;;  %v1412_v8 = vld [vmem:[%s1896_s2 + $0x50] sm:$0xff]   ;;  %v1403_v27 = vld [vmem:[%s1896_s2 + $0x8] sm:$0xff]  }
   0xc   : > { %1303 = vmatprep.subr.bf16.mxu0 %v1395_v0  ;;  %s1385_s22 = smul.u32 48, %s1901_s19  ;;  %v1402_v7 = vld [vmem:[%s1896_s2] sm:$0xff]   ;;  %1349 = vmatprep.mubr.msk.bf16.mxu1 %vm550_vm1, %v1412_v8  ;;  %v1413_v28 = vld [vmem:[%s1896_s2 + $0x58] sm:$0xff]   ;;  %v1404_v29 = vld [vmem:[%s1896_s2 + $0x10] sm:$0xff]   ;;  %vm825_vm2 = vcmask 261120   ;;  %s238_s30 = scalar_lea.vmem %s1898_s4, %s1901_s19  ;;  %vm960_vm3 = vcmask 253952  }
   0xd   : > { %1304 = vmatpush3.bf16.msra.mxu0 %v1395_v0  ;;  %v1414_v30 = vld [vmem:[%s1896_s2 + $0x60] sm:$0xff]   ;;  %v1405_v31 = vld [vmem:[%s1896_s2 + $0x18] sm:$0xff]   ;;  %v1415_v32 = vld [vmem:[%s1896_s2 + $0x68] sm:$0xff]   ;;  %s1386_s24 = smul.u32 344, %s1901_s19  ;;  %s241_s8 = scalar_lea.vmem %s1899_s5, %s1901_s19 }
   0xe   : > { %s230_s25 = scalar_lea.vmem %s1894_s0, %s1385_s22  ;;  %v1406_v33 = vld [vmem:[%s1896_s2 + $0x20] sm:$0xff]   ;;  %v1416_v34 = vld [vmem:[%s1896_s2 + $0x70] sm:$0xff]   ;;  %v1407_v35 = vld [vmem:[%s1896_s2 + $0x28] sm:$0xff]  }
   0xf   : > { %v1396_v1 = vld [vmem:[%s230_s25] sm:$0xff]   ;;  %v1397_v2 = vld [vmem:[%s230_s25 + $0x8] sm:$0xff]   ;;  %v1398_v3 = vld [vmem:[%s230_s25 + $0x10] sm:$0xff]   ;;  %s1571_s27 = scalar_lea.vmem %s1897_s3, %s1386_s24 }
  0x10   : > { %1305 = vmatprep.mubr.msk.bf16.mxu0 %vm293_vm0, %v1396_v1  ;;  %v1399_v4 = vld [vmem:[%s230_s25 + $0x18] sm:$0xff]   ;;  %v1400_v5 = vld [vmem:[%s230_s25 + $0x20] sm:$0xff]   ;;  %v1401_v6 = vld [vmem:[%s230_s25 + $0x28] sm:$0xff]  }
  0x11   : > { %1306 = vmatmul.mubr.msk.bf16.vlgmr.msra.gmra.mxu0 %vm293_vm0, %v1397_v2  ;;  %v1417_v36 = vld [vmem:[%s1896_s2 + $0x78] sm:$0xff]   ;;  %v1408_v37 = vld [vmem:[%s1896_s2 + $0x30] sm:$0xff]   ;;  %v1418_v38 = vld [vmem:[%s1896_s2 + $0x80] sm:$0xff]  }
  0x12   : > { %1309 = vmatprep.mubr.msk.bf16.mxu0 %vm293_vm0, %v1398_v3  ;;  %v1409_v39 = vld [vmem:[%s1896_s2 + $0x38] sm:$0xff]   ;;  %v1419_v40 = vld [vmem:[%s1896_s2 + $0x88] sm:$0xff]   ;;  %v1410_v41 = vld [vmem:[%s1896_s2 + $0x40] sm:$0xff]  }
  0x13   : > { %v1420_v42 = vld [vmem:[%s1896_s2 + $0x90] sm:$0xff]   ;;  %v1411_v43 = vld [vmem:[%s1896_s2 + $0x48] sm:$0xff]   ;;  %v1421_v44 = vld [vmem:[%s1896_s2 + $0x98] sm:$0xff]  }
  0x14   : > { %v1422_v45 = vld [vmem:[%s1896_s2 + $0xa0] sm:$0xff]   ;;  %v1423_v46 = vld [vmem:[%s1896_s2 + $0xa8] ss:$0 sps:$4 sm:$0xff]  }
  0x19   : > { %1310 = vmatmul.mubr.msk.bf16.gmra.mxu0 %vm293_vm0, %v1399_v4 }
  0x1a   : > { %1313 = vmatprep.mubr.msk.bf16.mxu0 %vm293_vm0, %v1400_v5 }
  0x21   : > { %1314 = vmatmul.mubr.msk.bf16.gmra.mxu0 %vm293_vm0, %v1401_v6 }
  0x22   : > { %1329 = vmatprep.mubr.msk.bf16.mxu0 %vm550_vm1, %v1402_v7 }
  0xd1   : > { %v1307_v9 = vpop.f32.mrf.mxu0 }
  0xd3   : > { %v346_v10 = vpop.f32.mrf.mxu0 }
  0xd5   : > { %v1308_v11 = vpop.f32.mrf.mxu0 }
  0xd6   : > { %v437_v25 = vpack.c.bf16 %v1308_v11, %v1307_v9 }
  0xd7   : > { %v349_v12 = vpop.f32.mrf.mxu0 }
  0xd8   : > { %v436_v26 = vpack.c.bf16 %v349_v12, %v346_v10 }
  0xd9   : > { %v1311_v13 = vpop.f32.mrf.mxu0 }
  0xdb   : > { %v362_v14 = vpop.f32.mrf.mxu0 }
  0xdd   : > { %v1312_v15 = vpop.f32.mrf.mxu0 }
  0xde   : > { %v439_v23 = vpack.c.bf16 %v1312_v15, %v1311_v13 }
  0xdf   : > { %v365_v16 = vpop.f32.mrf.mxu0 }
  0xe0   : > { %v438_v24 = vpack.c.bf16 %v365_v16, %v362_v14 }
  0xe1   : > { %v1315_v17 = vpop.f32.mrf.mxu0 }
  0xe3   : > { %v378_v18 = vpop.f32.mrf.mxu0 }
  0xe5   : > { %v1316_v19 = vpop.f32.mrf.mxu0 }
  0xe6   : > { %v441_v20 = vpack.c.bf16 %v1316_v19, %v1315_v17 }
  0xe7   : > { %v381_v21 = vpop.f32.mrf.mxu0 }
  0xe8   : > { %v440_v22 = vpack.c.bf16 %v381_v21, %v378_v18  ;;  %1317 = vmatprep.subr.bf16.mxu0 %v441_v20  ;;  %1373 = vmatprep.subr.bf16.mxu1 %v441_v20 }
  0xe9   : > { %1318 = vmatpush3.bf16.msra.mxu0 %v441_v20  ;;  %1379 = vmatpush3.bf16.msra.mxu1 %v441_v20 }
  0xea   : > { %1319 = vmatprep.subr.bf16.mxu0 %v440_v22  ;;  %1374 = vmatprep.subr.bf16.mxu1 %v440_v22 }
  0xed   : > { %1320 = vmatpush3.bf16.msra.mxu0 %v440_v22  ;;  %1380 = vmatpush3.bf16.msra.mxu1 %v440_v22 }
  0xee   : > { %1321 = vmatprep.subr.bf16.mxu0 %v439_v23  ;;  %1375 = vmatprep.subr.bf16.mxu1 %v439_v23 }
  0xf1   : > { %1322 = vmatpush3.bf16.msra.mxu0 %v439_v23  ;;  %1381 = vmatpush3.bf16.msra.mxu1 %v439_v23 }
  0xf2   : > { %1323 = vmatprep.subr.bf16.mxu0 %v438_v24  ;;  %1376 = vmatprep.subr.bf16.mxu1 %v438_v24 }
  0xf5   : > { %1324 = vmatpush3.bf16.msra.mxu0 %v438_v24  ;;  %1382 = vmatpush3.bf16.msra.mxu1 %v438_v24 }
  0xf6   : > { %1325 = vmatprep.subr.bf16.mxu0 %v437_v25  ;;  %1377 = vmatprep.subr.bf16.mxu1 %v437_v25 }
  0xf9   : > { %1326 = vmatpush3.bf16.msra.mxu0 %v437_v25  ;;  %1383 = vmatpush3.bf16.msra.mxu1 %v437_v25 }
  0xfa   : > { %1327 = vmatprep.subr.bf16.mxu0 %v436_v26  ;;  %1378 = vmatprep.subr.bf16.mxu1 %v436_v26 }
  0xfd   : > { %1328 = vmatpush3.bf16.msra.mxu0 %v436_v26  ;;  %1384 = vmatpush3.bf16.msra.mxu1 %v436_v26 }
 0x100   : > { %1330 = vmatmul.mubr.msk.bf16.vlgmr.msra.gmra.mxu0 %vm550_vm1, %v1403_v27  ;;  %1350 = vmatmul.mubr.msk.bf16.vlgmr.msra.gmra.mxu1 %vm550_vm1, %v1413_v28 }
 0x101   : > { %1333 = vmatprep.mubr.msk.bf16.mxu0 %vm550_vm1, %v1404_v29  ;;  %1353 = vmatprep.mubr.msk.bf16.mxu1 %vm550_vm1, %v1414_v30 }
 0x108   : > { %1334 = vmatmul.mubr.msk.bf16.gmra.mxu0 %vm550_vm1, %v1405_v31  ;;  %1354 = vmatmul.mubr.msk.bf16.gmra.mxu1 %vm550_vm1, %v1415_v32 }
 0x109   : > { %1337 = vmatprep.mubr.msk.bf16.mxu0 %vm550_vm1, %v1406_v33  ;;  %1357 = vmatprep.mubr.msk.bf16.mxu1 %vm550_vm1, %v1416_v34 }
 0x110   : > { %1338 = vmatmul.mubr.msk.bf16.gmra.mxu0 %vm550_vm1, %v1407_v35  ;;  %1358 = vmatmul.mubr.msk.bf16.gmra.mxu1 %vm550_vm1, %v1417_v36 }
 0x111   : > { %1341 = vmatprep.mubr.msk.bf16.mxu0 %vm550_vm1, %v1408_v37  ;;  %1361 = vmatprep.mubr.msk.bf16.mxu1 %vm550_vm1, %v1418_v38 }
 0x118   : > { %1342 = vmatmul.mubr.msk.bf16.gmra.mxu0 %vm550_vm1, %v1409_v39  ;;  %1362 = vmatmul.mubr.msk.bf16.gmra.mxu1 %vm550_vm1, %v1419_v40 }
 0x119   : > { %1345 = vmatprep.mubr.msk.bf16.mxu0 %vm550_vm1, %v1410_v41  ;;  %1365 = vmatprep.mubr.msk.bf16.mxu1 %vm550_vm1, %v1420_v42 }
 0x120   : > { %1346 = vmatmul.mubr.msk.bf16.gmra.mxu0 %vm550_vm1, %v1411_v43  ;;  %1366 = vmatmul.mubr.msk.bf16.gmra.mxu1 %vm550_vm1, %v1421_v44 }
 0x121   : > { %1369 = vmatprep.mubr.msk.bf16.mxu1 %vm550_vm1, %v1422_v45 }
 0x128   : > { %1370 = vmatmul.mubr.msk.bf16.gmra.mxu1 %vm550_vm1, %v1423_v46 }
 0x1c0   : > { %v1331_v47 = vpop.f32.mrf.mxu0  ;;  %v1573_v48 = vpop.f32.mrf.mxu1 }
 0x1c1   : > { %828 = vst.msk [vmem:[%s1571_s27 + $0x10] sm:$0xff] %vm825_vm2, %v1331_v47  ;;  %848 = vst.msk [vmem:[%s1571_s27 + $0xb0] sm:$0xff] %vm825_vm2, %v1573_v48  ;;  %v964_v56 = vmul.f32 %v1331_v47, %v1331_v47  ;;  %v872_v63 = vsel %vm825_vm2, %v1331_v47, 0.0 }
 0x1c2   : > { %v651_v49 = vpop.f32.mrf.mxu0  ;;  %v1580_v50 = vpop.f32.mrf.mxu1 }
 0x1c3   : > { %826 = vst.msk [vmem:[%s1571_s27] sm:$0xff] %vm825_vm2, %v651_v49  ;;  %846 = vst.msk [vmem:[%s1571_s27 + $0xa0] sm:$0xff] %vm825_vm2, %v1580_v50  ;;  %v962_v53 = vmul.f32 %v651_v49, %v651_v49  ;;  %v869_v57 = vsel %vm825_vm2, %v651_v49, 0.0  ;;  %v1008_v7 = vsel %vm825_vm2, %v964_v56, 0.0 }
 0x1c4   : > { %v1332_v51 = vpop.f32.mrf.mxu0  ;;  %v1587_v52 = vpop.f32.mrf.mxu1 }
 0x1c5   : > { %829 = vst.msk [vmem:[%s1571_s27 + $0x18] sm:$0xff] %vm825_vm2, %v1332_v51  ;;  %849 = vst.msk [vmem:[%s1571_s27 + $0xb8] sm:$0xff] %vm825_vm2, %v1587_v52  ;;  %v1005_v0 = vsel %vm825_vm2, %v962_v53, 0.0  ;;  %v965_v1 = vmul.f32 %v1332_v51, %v1332_v51  ;;  %v874_v8 = vsel %vm825_vm2, %v1332_v51, 0.0 }
 0x1c6   : > { %v654_v54 = vpop.f32.mrf.mxu0  ;;  %v1594_v55 = vpop.f32.mrf.mxu1 }
 0x1c7   : > { %827 = vst.msk [vmem:[%s1571_s27 + $0x8] sm:$0xff] %vm825_vm2, %v654_v54  ;;  %v870_v58 = vsel %vm825_vm2, %v654_v54, 0.0  ;;  %v963_v59 = vmul.f32 %v654_v54, %v654_v54  ;;  %847 = vst.msk [vmem:[%s1571_s27 + $0xa8] sm:$0xff] %vm825_vm2, %v1594_v55  ;;  %v1010_v14 = vsel %vm825_vm2, %v965_v1, 0.0 }
 0x1c8   : > { %v871_v60 = vadd.f32 %v870_v58, %v869_v57  ;;  %v1335_v61 = vpop.f32.mrf.mxu0  ;;  %v1603_v62 = vpop.f32.mrf.mxu1 }
 0x1c9   : > { %v1006_v2 = vsel %vm825_vm2, %v963_v59, 0.0  ;;  %832 = vst.msk [vmem:[%s1571_s27 + $0x30] sm:$0xff] %vm825_vm2, %v1335_v61  ;;  %852 = vst.msk [vmem:[%s1571_s27 + $0xd0] sm:$0xff] %vm825_vm2, %v1603_v62  ;;  %v968_v20 = vmul.f32 %v1335_v61, %v1335_v61  ;;  %v880_v28 = vsel %vm825_vm2, %v1335_v61, 0.0 }
 0x1ca   : > { %v873_v3 = vadd.f32 %v872_v63, %v871_v60  ;;  %v1007_v4 = vadd.f32 %v1006_v2, %v1005_v0  ;;  %v667_v5 = vpop.f32.mrf.mxu0  ;;  %v1613_v6 = vpop.f32.mrf.mxu1 }
 0x1cb   : > { %830 = vst.msk [vmem:[%s1571_s27 + $0x20] sm:$0xff] %vm825_vm2, %v667_v5  ;;  %v966_v9 = vmul.f32 %v667_v5, %v667_v5  ;;  %850 = vst.msk [vmem:[%s1571_s27 + $0xc0] sm:$0xff] %vm825_vm2, %v1613_v6  ;;  %v876_v15 = vsel %vm825_vm2, %v667_v5, 0.0  ;;  %v1016_v35 = vsel %vm825_vm2, %v968_v20, 0.0 }
 0x1cc   : > { %v1009_v10 = vadd.f32 %v1008_v7, %v1007_v4  ;;  %v875_v11 = vadd.f32 %v874_v8, %v873_v3  ;;  %v1336_v12 = vpop.f32.mrf.mxu0  ;;  %v1622_v13 = vpop.f32.mrf.mxu1 }
 0x1cd   : > { %833 = vst.msk [vmem:[%s1571_s27 + $0x38] sm:$0xff] %vm825_vm2, %v1336_v12  ;;  %853 = vst.msk [vmem:[%s1571_s27 + $0xd8] sm:$0xff] %vm825_vm2, %v1622_v13  ;;  %v1012_v21 = vsel %vm825_vm2, %v966_v9, 0.0  ;;  %v969_v29 = vmul.f32 %v1336_v12, %v1336_v12  ;;  %v882_v36 = vsel %vm825_vm2, %v1336_v12, 0.0 }
 0x1ce   : > { %v877_v16 = vadd.f32 %v876_v15, %v875_v11  ;;  %v1011_v17 = vadd.f32 %v1010_v14, %v1009_v10  ;;  %v670_v18 = vpop.f32.mrf.mxu0  ;;  %v1631_v19 = vpop.f32.mrf.mxu1 }
 0x1cf   : > { %831 = vst.msk [vmem:[%s1571_s27 + $0x28] sm:$0xff] %vm825_vm2, %v670_v18  ;;  %v878_v22 = vsel %vm825_vm2, %v670_v18, 0.0  ;;  %v967_v23 = vmul.f32 %v670_v18, %v670_v18  ;;  %851 = vst.msk [vmem:[%s1571_s27 + $0xc8] sm:$0xff] %vm825_vm2, %v1631_v19  ;;  %v1018_v42 = vsel %vm825_vm2, %v969_v29, 0.0 }
 0x1d0   : > { %v1013_v24 = vadd.f32 %v1012_v21, %v1011_v17  ;;  %v879_v25 = vadd.f32 %v878_v22, %v877_v16  ;;  %v1339_v26 = vpop.f32.mrf.mxu0  ;;  %v1640_v27 = vpop.f32.mrf.mxu1 }
 0x1d1   : > { %v1014_v30 = vsel %vm825_vm2, %v967_v23, 0.0  ;;  %836 = vst.msk [vmem:[%s1571_s27 + $0x50] sm:$0xff] %vm825_vm2, %v1339_v26  ;;  %856 = vst.msk [vmem:[%s1571_s27 + $0xf0] sm:$0xff] %vm825_vm2, %v1640_v27  ;;  %v972_v49 = vmul.f32 %v1339_v26, %v1339_v26  ;;  %v888_v60 = vsel %vm825_vm2, %v1339_v26, 0.0 }
 0x1d2   : > { %v881_v31 = vadd.f32 %v880_v28, %v879_v25  ;;  %v1015_v32 = vadd.f32 %v1014_v30, %v1013_v24  ;;  %v683_v33 = vpop.f32.mrf.mxu0  ;;  %v1649_v34 = vpop.f32.mrf.mxu1 }
 0x1d3   : > { %834 = vst.msk [vmem:[%s1571_s27 + $0x40] sm:$0xff] %vm825_vm2, %v683_v33  ;;  %v970_v37 = vmul.f32 %v683_v33, %v683_v33  ;;  %854 = vst.msk [vmem:[%s1571_s27 + $0xe0] sm:$0xff] %vm825_vm2, %v1649_v34  ;;  %v884_v43 = vsel %vm825_vm2, %v683_v33, 0.0  ;;  %v1024_v4 = vsel %vm825_vm2, %v972_v49, 0.0 }
 0x1d4   : > { %v1017_v38 = vadd.f32 %v1016_v35, %v1015_v32  ;;  %v883_v39 = vadd.f32 %v882_v36, %v881_v31  ;;  %v1340_v40 = vpop.f32.mrf.mxu0  ;;  %v1658_v41 = vpop.f32.mrf.mxu1 }
 0x1d5   : > { %837 = vst.msk [vmem:[%s1571_s27 + $0x58] sm:$0xff] %vm825_vm2, %v1340_v40  ;;  %857 = vst.msk [vmem:[%s1571_s27 + $0xf8] sm:$0xff] %vm825_vm2, %v1658_v41  ;;  %v1020_v51 = vsel %vm825_vm2, %v970_v37, 0.0  ;;  %v973_v61 = vmul.f32 %v1340_v40, %v1340_v40  ;;  %v890_v5 = vsel %vm825_vm2, %v1340_v40, 0.0 }
 0x1d6   : > { %v885_v44 = vadd.f32 %v884_v43, %v883_v39  ;;  %v1019_v45 = vadd.f32 %v1018_v42, %v1017_v38  ;;  %v686_v46 = vpop.f32.mrf.mxu0  ;;  %v1667_v47 = vpop.f32.mrf.mxu1 }
 0x1d7   : > { %835 = vst.msk [vmem:[%s1571_s27 + $0x48] sm:$0xff] %vm825_vm2, %v686_v46  ;;  %v886_v53 = vsel %vm825_vm2, %v686_v46, 0.0  ;;  %v971_v54 = vmul.f32 %v686_v46, %v686_v46  ;;  %855 = vst.msk [vmem:[%s1571_s27 + $0xe8] sm:$0xff] %vm825_vm2, %v1667_v47  ;;  %v1026_v12 = vsel %vm825_vm2, %v973_v61, 0.0 }
 0x1d8   : > { %v1021_v56 = vadd.f32 %v1020_v51, %v1019_v45  ;;  %v887_v57 = vadd.f32 %v886_v53, %v885_v44  ;;  %v1343_v58 = vpop.f32.mrf.mxu0  ;;  %v1676_v59 = vpop.f32.mrf.mxu1 }
 0x1d9   : > { %v1022_v63 = vsel %vm825_vm2, %v971_v54, 0.0  ;;  %840 = vst.msk [vmem:[%s1571_s27 + $0x70] sm:$0xff] %vm825_vm2, %v1343_v58  ;;  %860 = vst.msk [vmem:[%s1571_s27 + $0x110] sm:$0xff] %vm825_vm2, %v1676_v59  ;;  %v976_v20 = vmul.f32 %v1343_v58, %v1343_v58  ;;  %v896_v29 = vsel %vm825_vm2, %v1343_v58, 0.0 }
 0x1da   : > { %v889_v0 = vadd.f32 %v888_v60, %v887_v57  ;;  %v1023_v1 = vadd.f32 %v1022_v63, %v1021_v56  ;;  %v699_v2 = vpop.f32.mrf.mxu0  ;;  %v1685_v3 = vpop.f32.mrf.mxu1 }
 0x1db   : > { %838 = vst.msk [vmem:[%s1571_s27 + $0x60] sm:$0xff] %vm825_vm2, %v699_v2  ;;  %v974_v7 = vmul.f32 %v699_v2, %v699_v2  ;;  %858 = vst.msk [vmem:[%s1571_s27 + $0x100] sm:$0xff] %vm825_vm2, %v1685_v3  ;;  %v892_v14 = vsel %vm825_vm2, %v699_v2, 0.0  ;;  %v1032_v37 = vsel %vm825_vm2, %v976_v20, 0.0  ;;  %v908_v20 = vsel %vm825_vm2, %v1580_v50, 0.0 }
 0x1dc   : > { %v1025_v8 = vadd.f32 %v1024_v4, %v1023_v1  ;;  %v891_v9 = vadd.f32 %v890_v5, %v889_v0  ;;  %v1344_v10 = vpop.f32.mrf.mxu0  ;;  %v1694_v11 = vpop.f32.mrf.mxu1 }
 0x1dd   : > { %841 = vst.msk [vmem:[%s1571_s27 + $0x78] sm:$0xff] %vm825_vm2, %v1344_v10  ;;  %861 = vst.msk [vmem:[%s1571_s27 + $0x118] sm:$0xff] %vm825_vm2, %v1694_v11  ;;  %v1028_v21 = vsel %vm825_vm2, %v974_v7, 0.0  ;;  %v977_v30 = vmul.f32 %v1344_v10, %v1344_v10  ;;  %v898_v38 = vsel %vm825_vm2, %v1344_v10, 0.0 }
 0x1de   : > { %v893_v15 = vadd.f32 %v892_v14, %v891_v9  ;;  %v1027_v16 = vadd.f32 %v1026_v12, %v1025_v8  ;;  %v702_v17 = vpop.f32.mrf.mxu0  ;;  %v1703_v18 = vpop.f32.mrf.mxu1  ;;  %v982_v12 = vmul.f32 %v1580_v50, %v1580_v50 }
 0x1df   : > { %839 = vst.msk [vmem:[%s1571_s27 + $0x68] sm:$0xff] %vm825_vm2, %v702_v17  ;;  %v894_v22 = vsel %vm825_vm2, %v702_v17, 0.0  ;;  %v975_v23 = vmul.f32 %v702_v17, %v702_v17  ;;  %859 = vst.msk [vmem:[%s1571_s27 + $0x108] sm:$0xff] %vm825_vm2, %v1703_v18  ;;  %v1034_v45 = vsel %vm825_vm2, %v977_v30, 0.0 }
 0x1e0   : > { %v1029_v24 = vadd.f32 %v1028_v21, %v1027_v16  ;;  %v895_v25 = vadd.f32 %v894_v22, %v893_v15  ;;  %v1347_v26 = vpop.f32.mrf.mxu0  ;;  %v1712_v28 = vpop.f32.mrf.mxu1  ;;  %v983_v21 = vmul.f32 %v1594_v55, %v1594_v55 }
 0x1e1   : > { %v1030_v31 = vsel %vm825_vm2, %v975_v23, 0.0  ;;  %844 = vst.msk [vmem:[%s1571_s27 + $0x90] sm:$0xff] %vm825_vm2, %v1347_v26  ;;  %864 = vst.msk [vmem:[%s1571_s27 + $0x130] sm:$0xff] %vm825_vm2, %v1712_v28  ;;  %v980_v56 = vmul.f32 %v1347_v26, %v1347_v26  ;;  %v904_v1 = vsel %vm825_vm2, %v1347_v26, 0.0  ;;  %v1044_v26 = vsel %vm825_vm2, %v982_v12, 0.0 }
 0x1e2   : > { %v897_v32 = vadd.f32 %v896_v29, %v895_v25  ;;  %v1031_v33 = vadd.f32 %v1030_v31, %v1029_v24  ;;  %v715_v35 = vpop.f32.mrf.mxu0  ;;  %v1721_v36 = vpop.f32.mrf.mxu1  ;;  %v984_v25 = vmul.f32 %v1573_v48, %v1573_v48  ;;  %v910_v29 = vsel %vm825_vm2, %v1594_v55, 0.0 }
 0x1e3   : > { %842 = vst.msk [vmem:[%s1571_s27 + $0x80] sm:$0xff] %vm825_vm2, %v715_v35  ;;  %v978_v39 = vmul.f32 %v715_v35, %v715_v35  ;;  %862 = vst.msk [vmem:[%s1571_s27 + $0x120] sm:$0xff] %vm825_vm2, %v1721_v36  ;;  %v900_v46 = vsel %vm825_vm2, %v715_v35, 0.0  ;;  %v1040_v9 = vsel %vm825_vm2, %v980_v56, 0.0  ;;  %v912_v31 = vsel %vm825_vm2, %v1573_v48, 0.0 }
 0x1e4   : > { %v1033_v40 = vadd.f32 %v1032_v37, %v1031_v33  ;;  %v899_v42 = vadd.f32 %v898_v38, %v897_v32  ;;  %v1348_v43 = vpop.f32.mrf.mxu0  ;;  %v1730_v44 = vpop.f32.mrf.mxu1  ;;  %v985_v32 = vmul.f32 %v1587_v52, %v1587_v52  ;;  %v1046_v33 = vsel %vm825_vm2, %v983_v21, 0.0 }
 0x1e5   : > { %845 = vst.msk [vmem:[%s1571_s27 + $0x98] sm:$0xff] %vm825_vm2, %v1348_v43  ;;  %865 = vst.msk [vmem:[%s1571_s27 + $0x138] sm:$0xff] %vm825_vm2, %v1730_v44  ;;  %v1036_v57 = vsel %vm825_vm2, %v978_v39, 0.0  ;;  %v981_v2 = vmul.f32 %v1348_v43, %v1348_v43  ;;  %v906_v10 = vsel %vm825_vm2, %v1348_v43, 0.0  ;;  %v1048_v38 = vsel %vm825_vm2, %v984_v25, 0.0 }
 0x1e6   : > { %v901_v49 = vadd.f32 %v900_v46, %v899_v42  ;;  %v1035_v51 = vadd.f32 %v1034_v45, %v1033_v40  ;;  %v718_v53 = vpop.f32.mrf.mxu0  ;;  %v1739_v54 = vpop.f32.mrf.mxu1  ;;  %v914_v55 = vsel %vm825_vm2, %v1587_v52, 0.0  ;;  %v986_v39 = vmul.f32 %v1613_v6, %v1613_v6 }
 0x1e7   : > { %843 = vst.msk [vmem:[%s1571_s27 + $0x88] sm:$0xff] %vm825_vm2, %v718_v53  ;;  %v902_v58 = vsel %vm825_vm2, %v718_v53, 0.0  ;;  %v979_v60 = vmul.f32 %v718_v53, %v718_v53  ;;  %863 = vst.msk [vmem:[%s1571_s27 + $0x128] sm:$0xff] %vm825_vm2, %v1739_v54  ;;  %v1042_v17 = vsel %vm825_vm2, %v981_v2, 0.0  ;;  %v1050_v43 = vsel %vm825_vm2, %v985_v32, 0.0 }
 0x1e8   : > { %v1037_v61 = vadd.f32 %v1036_v57, %v1035_v51  ;;  %v903_v63 = vadd.f32 %v902_v58, %v901_v49  ;;  %v1748_v0 = vpop.f32.mrf.mxu1  ;;  %v916_v48 = vsel %vm825_vm2, %v1613_v6, 0.0  ;;  %v987_v45 = vmul.f32 %v1631_v19, %v1631_v19 }
 0x1e9   : > { %v1038_v4 = vsel %vm825_vm2, %v979_v60, 0.0  ;;  %868 = vst.msk [vmem:[%s1571_s27 + $0x150] sm:$0xff] %vm825_vm2, %v1748_v0  ;;  %v988_v51 = vmul.f32 %v1603_v62, %v1603_v62  ;;  %v1052_v52 = vsel %vm825_vm2, %v986_v39, 0.0  ;;  %v918_v53 = vsel %vm825_vm2, %v1631_v19, 0.0 }
 0x1ea   : > { %v905_v5 = vadd.f32 %v904_v1, %v903_v63  ;;  %v1039_v7 = vadd.f32 %v1038_v4, %v1037_v61  ;;  %v1755_v8 = vpop.f32.mrf.mxu1  ;;  %v920_v58 = vsel %vm825_vm2, %v1603_v62, 0.0  ;;  %v989_v6 = vmul.f32 %v1622_v13, %v1622_v13 }
 0x1eb   : > { %866 = vst.msk [vmem:[%s1571_s27 + $0x140] sm:$0xff] %vm825_vm2, %v1755_v8  ;;  %v1054_v60 = vsel %vm825_vm2, %v987_v45, 0.0  ;;  %v1056_v1 = vsel %vm825_vm2, %v988_v51, 0.0  ;;  %v922_v2 = vsel %vm825_vm2, %v1622_v13, 0.0  ;;  %v990_v19 = vmul.f32 %v1649_v34, %v1649_v34 }
 0x1ec   : > { %v907_v14 = vadd.f32 %v906_v10, %v905_v5  ;;  %v1041_v15 = vadd.f32 %v1040_v9, %v1039_v7  ;;  %v1372_v16 = vpop.f32.mrf.mxu1  ;;  %v1058_v7 = vsel %vm825_vm2, %v989_v6, 0.0  ;;  %v924_v62 = vsel %vm825_vm2, %v1649_v34, 0.0 }
 0x1ed   : > { %v991_v9 = vmul.f32 %v1667_v47, %v1667_v47  ;;  %v1060_v13 = vsel %vm825_vm2, %v990_v19, 0.0  ;;  %v993_v34 = vmul.f32 %v1658_v41, %v1658_v41  ;;  %v936_v39 = vsel %vm825_vm2, %v1676_v59, 0.0 }
 0x1ee   : > { %v1043_v22 = vadd.f32 %v1042_v17, %v1041_v15  ;;  %v909_v23 = vadd.f32 %v908_v20, %v907_v14  ;;  %v1769_v24 = vpop.f32.mrf.mxu1  ;;  %v992_v14 = vmul.f32 %v1640_v27, %v1640_v27  ;;  %v926_v15 = vsel %vm825_vm2, %v1667_v47, 0.0 }
 0x1ef   : > { %867 = vst.msk [vmem:[%s1571_s27 + $0x148] sm:$0xff] %vm825_vm2, %v1769_v24  ;;  %v928_v20 = vsel %vm825_vm2, %v1640_v27, 0.0  ;;  %v1062_v21 = vsel %vm825_vm2, %v991_v9, 0.0  ;;  %v994_v47 = vmul.f32 %v1685_v3, %v1685_v3  ;;  %v932_v27 = vsel %vm825_vm2, %v1685_v3, 0.0 }
 0x1f0   : > { %v911_v30 = vadd.f32 %v910_v29, %v909_v23  ;;  %v1045_v50 = vadd.f32 %v1044_v26, %v1043_v22  ;;  %v1064_v25 = vsel %vm825_vm2, %v992_v14, 0.0  ;;  %v930_v26 = vsel %vm825_vm2, %v1658_v41, 0.0 }
 0x1f1   : > { %v1068_v41 = vsel %vm825_vm2, %v994_v47, 0.0  ;;  %v997_v3 = vmul.f32 %v1694_v11, %v1694_v11  ;;  %v938_v45 = vsel %vm825_vm2, %v1694_v11, 0.0  ;;  %v1003_v9 = vmul.f32 %v1769_v24, %v1769_v24 }
 0x1f2   : > { %v913_v35 = vadd.f32 %v912_v31, %v911_v30  ;;  %v1047_v37 = vadd.f32 %v1046_v33, %v1045_v50  ;;  %v1066_v50 = vsel %vm825_vm2, %v993_v34, 0.0  ;;  %v995_v31 = vmul.f32 %v1703_v18, %v1703_v18 }
 0x1f3   : > { %v1074_v51 = vsel %vm825_vm2, %v997_v3, 0.0  ;;  %v1004_v14 = vmul.f32 %v1748_v0, %v1748_v0 }
 0x1f4   : > { %v1049_v40 = vadd.f32 %v1048_v38, %v1047_v37  ;;  %v915_v42 = vadd.f32 %v914_v55, %v913_v35  ;;  %v996_v35 = vmul.f32 %v1676_v59, %v1676_v59  ;;  %v934_v37 = vsel %vm825_vm2, %v1703_v18, 0.0 }
 0x1f5   : > { %v998_v18 = vmul.f32 %v1721_v36, %v1721_v36  ;;  %v940_v59 = vsel %vm825_vm2, %v1721_v36, 0.0  ;;  %v1001_v36 = vmul.f32 %v1730_v44, %v1730_v44 }
 0x1f6   : > { %v917_v46 = vadd.f32 %v916_v48, %v915_v42  ;;  %v1051_v49 = vadd.f32 %v1050_v43, %v1049_v40  ;;  %v1070_v40 = vsel %vm825_vm2, %v995_v31, 0.0  ;;  %v1072_v48 = vsel %vm825_vm2, %v996_v35, 0.0 }
 0x1f7   : > { %v1076_v11 = vsel %vm825_vm2, %v998_v18, 0.0 }
 0x1f8   : > { %v1053_v56 = vadd.f32 %v1052_v52, %v1051_v49  ;;  %v919_v57 = vadd.f32 %v918_v53, %v917_v46  ;;  %v999_v52 = vmul.f32 %v1739_v54, %v1739_v54 }
 0x1fa   : > { %v921_v61 = vadd.f32 %v920_v58, %v919_v57  ;;  %v1055_v63 = vadd.f32 %v1054_v60, %v1053_v56  ;;  %v1000_v57 = vmul.f32 %v1712_v28, %v1712_v28  ;;  %v942_v58 = vsel %vm825_vm2, %v1739_v54, 0.0 }
 0x1fb   : > { %v1002_v54 = vmul.f32 %v1755_v8, %v1755_v8 }
 0x1fc   : > { %v1057_v4 = vadd.f32 %v1056_v1, %v1055_v63  ;;  %v923_v5 = vadd.f32 %v922_v2, %v921_v61  ;;  %v944_v61 = vsel %vm825_vm2, %v1712_v28, 0.0  ;;  %v1078_v63 = vsel %vm825_vm2, %v999_v52, 0.0 }
 0x1fd   : > { %v1080_v19 = vsel %vm825_vm2, %v1000_v57, 0.0  ;;  %v948_v28 = vsel %vm825_vm2, %v1755_v8, 0.0  ;;  %v1086_v8 = vsel %vm825_vm2, %v1003_v9, 0.0 }
 0x1fe   : > { %v925_v10 = vadd.f32 %v924_v62, %v923_v5  ;;  %v1059_v12 = vadd.f32 %v1058_v7, %v1057_v4  ;;  %v946_v4 = vsel %vm825_vm2, %v1730_v44, 0.0  ;;  %v1082_v62 = vsel %vm825_vm2, %v1001_v36, 0.0 }
 0x1ff   : > { %v1084_v44 = vsel %vm825_vm2, %v1002_v54, 0.0 }
 0x200   : > { %v1061_v16 = vadd.f32 %v1060_v13, %v1059_v12  ;;  %v927_v17 = vadd.f32 %v926_v15, %v925_v10  ;;  %v950_v13 = vsel %vm825_vm2, %v1769_v24, 0.0 }
 0x202   : > { %v929_v22 = vadd.f32 %v928_v20, %v927_v17  ;;  %v1063_v23 = vadd.f32 %v1062_v21, %v1061_v16  ;;  %v952_v17 = vsel %vm825_vm2, %v1748_v0, 0.0  ;;  %v1088_v21 = vsel %vm825_vm2, %v1004_v14, 0.0 }
 0x204   : > { %v1065_v29 = vadd.f32 %v1064_v25, %v1063_v23  ;;  %v931_v30 = vadd.f32 %v930_v26, %v929_v22 }
 0x206   : > { %v933_v32 = vadd.f32 %v932_v27, %v931_v30  ;;  %v1067_v33 = vadd.f32 %v1066_v50, %v1065_v29 }
 0x208   : > { %v1069_v38 = vadd.f32 %v1068_v41, %v1067_v33  ;;  %v935_v55 = vadd.f32 %v934_v37, %v933_v32 }
 0x20a   : > { %v937_v42 = vadd.f32 %v936_v39, %v935_v55  ;;  %v1071_v43 = vadd.f32 %v1070_v40, %v1069_v38 }
 0x20c   : > { %v1073_v46 = vadd.f32 %v1072_v48, %v1071_v43  ;;  %v939_v49 = vadd.f32 %v938_v45, %v937_v42 }
 0x20e   : > { %v941_v53 = vadd.f32 %v940_v59, %v939_v49  ;;  %v1075_v56 = vadd.f32 %v1074_v51, %v1073_v46 }
 0x210   : > { %v1077_v6 = vadd.f32 %v1076_v11, %v1075_v56  ;;  %v943_v60 = vadd.f32 %v942_v58, %v941_v53 }
 0x212   : > { %v945_v1 = vadd.f32 %v944_v61, %v943_v60  ;;  %v1079_v2 = vadd.f32 %v1078_v63, %v1077_v6 }
 0x214   : > { %v1081_v5 = vadd.f32 %v1080_v19, %v1079_v2  ;;  %v947_v7 = vadd.f32 %v946_v4, %v945_v1 }
 0x216   : > { %v949_v10 = vadd.f32 %v948_v28, %v947_v7  ;;  %v1083_v12 = vadd.f32 %v1082_v62, %v1081_v5 }
 0x218   : > { %v1085_v15 = vadd.f32 %v1084_v44, %v1083_v12  ;;  %v951_v16 = vadd.f32 %v950_v13, %v949_v10 }
 0x21a   : > { %v953_v20 = vadd.f32 %v952_v17, %v951_v16  ;;  %v1087_v34 = vadd.f32 %v1086_v8, %v1085_v15 }
 0x21c   : > { %v954_v22 = vrot.slane %v953_v20, 4  ;;  %v1089_v23 = vadd.f32 %v1088_v21, %v1087_v34 }
 0x21e   : > { %v955_v25 = vadd.f32 %v954_v22, %v953_v20  ;;  %v1090_v26 = vrot.slane %v1089_v23, 4 }
 0x220   : > { %v956_v47 = vrot.slane %v955_v25, 2  ;;  %v1091_v29 = vadd.f32 %v1090_v26, %v1089_v23 }
 0x222   : > { %v957_v24 = vadd.f32 %v956_v47, %v955_v25  ;;  %v1092_v30 = vrot.slane %v1091_v29, 2 }
 0x224   : > { %v958_v50 = vrot.slane %v957_v24, 1  ;;  %v1093_v27 = vadd.f32 %v1092_v30, %v1091_v29 }
 0x226   : > { %v959_v0 = vadd.f32 %v958_v50, %v957_v24  ;;  %v1094_v31 = vrot.slane %v1093_v27, 1 }
 0x228   : > { %961 = vst.msk [vmem:[%s238_s30] sm:$0x1] %vm960_vm3, %v959_v0  ;;  %v1095_v32 = vadd.f32 %v1094_v31, %v1093_v27 }
 0x22a   : > { %1096 = vst.msk [vmem:[%s241_s8] sm:$0x1] %vm960_vm3, %v1095_v32 }
 0x22b PF: > { %s16_s18 = sadd.s32 1, %s1430_s18  }
 0x22c   : > { %p13_p4 = scmp.ge.s32.totalorder %s16_s18, 4  }
 0x22e   :  { %15 = sbr.rel (!%p13_p4) target bundleno = 1 (0x1), region = 86 }

// kernel: ica_erdsnet_forward.3
= control target key start
LH: loop header
LB: loop body
LE: loop exit
PB: predicated region body
PF: predicated region fallthrough
CT: control target
= control target key end

     0   :  { %12 = vsyncpa [#allocation3], 0  ;;  %s1830_s0 = inlined_call_operand.vmem [shape: f32[2,344,32], index: 0, kind: input, shape index: {}]   ;;  %s1831_s1 = inlined_call_operand.vmem [shape: f32[1,32], index: 1, kind: input, shape index: {}]   ;;  %s1832_s2 = inlined_call_operand.vmem [shape: f32[1,32], index: 2, kind: input, shape index: {}]   ;;  %s1833_s3 = inlined_call_operand.vmem [shape: f32[8,344], index: 3, kind: input, shape index: {}]   ;;  %s1834_s4 = inlined_call_operand.vmem [shape: f32[4,32,8], index: 4, kind: input, shape index: {}]   ;;  %s1835_s5 = inlined_call_operand.hbm [shape: f32[4,1,4], index: 5, kind: output, shape index: {0}]   ;;  %s1836_s6 = inlined_call_operand.hbm [shape: f32[4,1,4], index: 6, kind: output, shape index: {1}]  }
   0x1   :  { %14 = vsyncpa [#allocation3 + $0x1], 0 }
   0x2   :  { %15 = vsyncpa [#allocation5], 0 }
   0x3   :  { %17 = vsyncpa [#allocation5 + $0x1], 0  ;;  %s1449_s21 = smov 0   ;;  %s1451_s22 = smov 0  }
   0x4   :  { %s1453_s23 = smov 0   ;;  %s1455_s24 = smov 0  }
   0x5 LB: > { %s1470_s25 = sadd.s32 4294967295, %s1405_s24   ;;  %s1083_s26 = sadd.s32 4294967294, %s1405_s24   ;;  %s1405_s24 = sphi %s1455_s24, %s1842_s24   ;;  %s1401_s23 = sphi %s1453_s23, %s1841_s23   ;;  %s1397_s22 = sphi %s1451_s22, %s1840_s22   ;;  %s1393_s21 = sphi %s1449_s21, %s1839_s21  }
   0x6   : > { %s1474_s27 = sadd.s32 1, %s1405_s24   ;;  %s140_s28 = sadd.s32 1, %s1401_s23 }
   0x7   : > { %s137_s29 = ssub.s32 %s1405_s24, %s1474_s27  ;;  %p150_p0 = scmp.ne.s32.totalorder %s1401_s23, %s1397_s22 }
   0x8   : > { %p138_p1 = scmp.eq.s32.totalorder %s137_s29, 0  ;;  %p151_p2 = scmp.eq.s32.totalorder %s1470_s25, 1 }
   0x9   : > { %p156_p3 = scmp.ne.s32.totalorder %s1397_s22, %s1393_s21  ;;  %p157_p4 = scmp.eq.s32.totalorder %s1083_s26, 1 }
   0xa   : > { %s1485_s30 = scalar_select %p138_p1, %s1401_s23, %s140_s28  }
   0xb   : > { %p1487_p5 = por %p151_p2, %p150_p0  ;;  %p1491_p6 = por %p157_p4, %p156_p3 }
   0xc   : > { %p1086_p7 = scmp.ge.s32.totalorder %s1405_s24, 1  ;;  %p221_p8 = scmp.lt.s32.totalorder %s1405_s24, 3 }
   0xe   : > { %p222_p9 = pnand %p1086_p7, %p221_p8 }
   0xf   : > { %p256_p10 = scmp.lt.s32.totalorder (!%p222_p9), %s1470_s25, 1 }
  0x10   : > { %225 = sbr.rel (%p222_p9) target bundleno = 1061 (0x425), region = 40 }
  0x15   : > { %v1407_v0 = vmov 0.0   ;;  %v450_v1 = vld [vmem:[%s1833_s3 + $0x8] sm:$0xff]  ;;  %s257_s11 = scalar_select %p256_p10, %s1470_s25, 1  ;;  %vm1408_vm0 = vmmov 0   ;;  %v1508_v2 = vld [vmem:[%s1831_s1] ss:$0 sm:$0xff] }
  0x16   : > { %1188 = vmatprep.subr.mxu1 %v1407_v0  ;;  %520 = vmatprep.mubr.f32.mxu0 %v450_v1  ;;  %v1518_v3 = vld [vmem:[%s1832_s2] ss:$0 sm:$0xff]  ;;  %vm452_vm1 = vcmask 719872   ;;  %vm607_vm2 = vcmask 261120   ;;  %vm928_vm3 = vcmask 58400   ;;  %vm910_vm4 = vcmask 25600  }
  0x17   : > { %1210 = vmatprep.mubr.msk.f32.mxu1 %vm1408_vm0, %v1407_v0  ;;  %s1257_s12 = smul.u32 344, %s257_s11  ;;  %s1409_s11 = smov 124   ;;  %vm924_vm5 = vcmask 24576   ;;  %vm926_vm6 = vcmask 25601  }
  0x19   : > { %s1513_s17 = scalar_lea.vmem %s1830_s0, %s1257_s12  ;;  %s1745_s12 = sand.u32 1, %s1397_s22  }
  0x1a   : > { %v294_v4 = vld [vmem:[%s1513_s17 + $0xf8] sm:$0xff]  ;;  %v293_v6 = vld [vmem:[%s1513_s17 + $0xf0] sm:$0xff]  ;;  %v292_v11 = vld [vmem:[%s1513_s17 + $0xe8] sm:$0xff]  ;;  %s1087_s13 = sshll.u32 %s1745_s12, 1 }
  0x1b   : > { %v278_v5 = vld [vmem:[%s1513_s17 + $0x78] sm:$0xff]  ;;  %v344_v7 = vmul.f32 %v1508_v2, %v294_v4  ;;  %v343_v9 = vmul.f32 %v1508_v2, %v293_v6  ;;  %v277_v10 = vld [vmem:[%s1513_s17 + $0x70] sm:$0xff]  ;;  %v276_v12 = vld [vmem:[%s1513_s17 + $0x68] sm:$0xff]  ;;  %v342_v14 = vmul.f32 %v1508_v2, %v292_v11  ;;  %s248_s14 = scalar_lea.vmem [#allocation2], %s1087_s13  ;;  %s255_s15 = scalar_lea.vmem [#allocation4], %s1087_s13 }
  0x1c   : > { %v328_v8 = vmul.f32 %v1508_v2, %v278_v5  ;;  %v327_v13 = vmul.f32 %v1508_v2, %v277_v10  ;;  %v326_v15 = vmul.f32 %v1508_v2, %v276_v12  ;;  %v291_v16 = vld [vmem:[%s1513_s17 + $0xe0] sm:$0xff]  ;;  %v290_v26 = vld [vmem:[%s1513_s17 + $0xd8] sm:$0xff]  ;;  %v289_v28 = vld [vmem:[%s1513_s17 + $0xd0] sm:$0xff]  ;;  %s973_s16 = sshll.u32 %s248_s14, 4  ;;  %s989_s18 = sshll.u32 %s255_s15, 4  ;;  %s1749_s16 = int_to_ptr.vmem [resolvable:$true] %s973_s16  ;;  %s1756_s18 = int_to_ptr.vmem [resolvable:$true] %s989_s18 }
  0x1d   : > { %v275_v17 = vld [vmem:[%s1513_s17 + $0x60] sm:$0xff]  ;;  %v394_v18 = vadd.f32 %v1518_v3, %v344_v7  ;;  %v393_v20 = vadd.f32 %v1518_v3, %v343_v9  ;;  %v341_v21 = vmul.f32 %v1508_v2, %v291_v16  ;;  %v392_v23 = vadd.f32 %v1518_v3, %v342_v14  ;;  %v274_v27 = vld [vmem:[%s1513_s17 + $0x58] sm:$0xff]  ;;  %v273_v33 = vld [vmem:[%s1513_s17 + $0x50] sm:$0xff]  ;;  %s1315_s10 = scalar_lea.vmem %s1749_s16, 32 }
  0x1e   : > { %v378_v19 = vadd.f32 %v1518_v3, %v328_v8  ;;  %v377_v22 = vadd.f32 %v1518_v3, %v327_v13  ;;  %v376_v24 = vadd.f32 %v1518_v3, %v326_v15  ;;  %v325_v25 = vmul.f32 %v1508_v2, %v275_v17  ;;  %v288_v34 = vld [vmem:[%s1513_s17 + $0xc8] sm:$0xff]  ;;  %v305_v40 = vld [vmem:[%s1513_s17 + $0x150] sm:$0xff]  ;;  %v287_v45 = vld [vmem:[%s1513_s17 + $0xc0] sm:$0xff]  ;;  %p1316_p11 = scmp.ne.s32.totalorder %s1749_s16, %s1315_s10 }
  0x1f   : > { %v437_v29 = vmul.f32 %v394_v18, %v394_v18  ;;  %v436_v31 = vmul.f32 %v393_v20, %v393_v20  ;;  %v391_v32 = vadd.f32 %v1518_v3, %v341_v21  ;;  %v272_v35 = vld [vmem:[%s1513_s17 + $0x48] sm:$0xff]  ;;  %v435_v37 = vmul.f32 %v392_v23, %v392_v23  ;;  %v271_v58 = vld [vmem:[%s1513_s17 + $0x40] sm:$0xff]  ;;  %v286_v60 = vld [vmem:[%s1513_s17 + $0xb8] sm:$0xff] }
  0x20   : > { %v421_v30 = vmul.f32 %v378_v19, %v378_v19  ;;  %v420_v36 = vmul.f32 %v377_v22, %v377_v22  ;;  %v419_v38 = vmul.f32 %v376_v24, %v376_v24  ;;  %v375_v39 = vadd.f32 %v1518_v3, %v325_v25  ;;  %v304_v59 = vld [vmem:[%s1513_s17 + $0x148] sm:$0xff]  ;;  %v270_v4 = vld [vmem:[%s1513_s17 + $0x38] sm:$0xff]  ;;  %v303_v5 = vld [vmem:[%s1513_s17 + $0x140] sm:$0xff]  ;;  %p1317_p12 = pnand %p1316_p11, %p1487_p5 }
  0x21   : > { %1121 = vmatprep.subr.mxu0 %v437_v29  ;;  %v434_v41 = vmul.f32 %v391_v32, %v391_v32  ;;  %v340_v42 = vmul.f32 %v1508_v2, %v290_v26  ;;  %v324_v43 = vmul.f32 %v1508_v2, %v274_v27  ;;  %v339_v44 = vmul.f32 %v1508_v2, %v289_v28  ;;  %v285_v6 = vld [vmem:[%s1513_s17 + $0xb0] sm:$0xff]  ;;  %v302_v23 = vld [vmem:[%s1513_s17 + $0x138] sm:$0xff]  ;;  %v284_v27 = vld [vmem:[%s1513_s17 + $0xa8] sm:$0xff] }
  0x22   : > { %1122 = vmatpush3.msra.mxu0 %v421_v30  ;;  %v418_v46 = vmul.f32 %v375_v39, %v375_v39  ;;  %v323_v47 = vmul.f32 %v1508_v2, %v273_v33  ;;  %v338_v48 = vmul.f32 %v1508_v2, %v288_v34  ;;  %v322_v49 = vmul.f32 %v1508_v2, %v272_v35  ;;  %v269_v19 = vld [vmem:[%s1513_s17 + $0x30] sm:$0xff]  ;;  %v268_v28 = vld [vmem:[%s1513_s17 + $0x28] sm:$0xff]  ;;  %v283_v34 = vld [vmem:[%s1513_s17 + $0xa0] sm:$0xff]  ;;  %p1318_p13 = pneg %p1317_p12 }
  0x23   : > { %1123 = vmatprep.subr.mxu0 %v436_v31  ;;  %v390_v50 = vadd.f32 %v1518_v3, %v340_v42  ;;  %v374_v51 = vadd.f32 %v1518_v3, %v324_v43  ;;  %v389_v52 = vadd.f32 %v1518_v3, %v339_v44  ;;  %v355_v53 = vmul.f32 %v1508_v2, %v305_v40  ;;  %v301_v33 = vld [vmem:[%s1513_s17 + $0x130] sm:$0xff] }
  0x24   : > { %1124 = vmatpush3.msra.mxu0 %v420_v36  ;;  %v373_v54 = vadd.f32 %v1518_v3, %v323_v47  ;;  %v388_v55 = vadd.f32 %v1518_v3, %v338_v48  ;;  %v372_v56 = vadd.f32 %v1518_v3, %v322_v49  ;;  %v337_v57 = vmul.f32 %v1508_v2, %v287_v45  ;;  %v267_v45 = vld [vmem:[%s1513_s17 + $0x20] sm:$0xff] }
  0x25   : > { %1125 = vmatprep.subr.mxu0 %v435_v37  ;;  %v433_v61 = vmul.f32 %v390_v50, %v390_v50  ;;  %v417_v62 = vmul.f32 %v374_v51, %v374_v51  ;;  %v432_v63 = vmul.f32 %v389_v52, %v389_v52  ;;  %v405_v1 = vadd.f32 %v1518_v3, %v355_v53  ;;  %v282_v50 = vld [vmem:[%s1513_s17 + $0x98] sm:$0xff] }
  0x26   : > { %1126 = vmatpush3.msra.mxu0 %v419_v38  ;;  %v416_v7 = vmul.f32 %v373_v54, %v373_v54  ;;  %v431_v8 = vmul.f32 %v388_v55, %v388_v55  ;;  %v415_v9 = vmul.f32 %v372_v56, %v372_v56  ;;  %v387_v10 = vadd.f32 %v1518_v3, %v337_v57  ;;  %v266_v54 = vld [vmem:[%s1513_s17 + $0x18] sm:$0xff] }
  0x27   : > { %1127 = vmatprep.subr.mxu0 %v434_v41  ;;  %v448_v11 = vmul.f32 %v405_v1, %v405_v1  ;;  %v321_v12 = vmul.f32 %v1508_v2, %v271_v58  ;;  %v354_v13 = vmul.f32 %v1508_v2, %v304_v59  ;;  %v336_v14 = vmul.f32 %v1508_v2, %v286_v60  ;;  %v299_v59 = vld [vmem:[%s1513_s17 + $0x120] sm:$0xff]  ;;  %v281_v60 = vld [vmem:[%s1513_s17 + $0x90] sm:$0xff] }
  0x28   : > { %1128 = vmatpush3.msra.mxu0 %v418_v46  ;;  %v430_v15 = vmul.f32 %v387_v10, %v387_v10  ;;  %v320_v16 = vmul.f32 %v1508_v2, %v270_v4  ;;  %v353_v17 = vmul.f32 %v1508_v2, %v303_v5  ;;  %v335_v18 = vmul.f32 %v1508_v2, %v285_v6  ;;  %v300_v46 = vld [vmem:[%s1513_s17 + $0x128] sm:$0xff]  ;;  %v265_v6 = vld [vmem:[%s1513_s17 + $0x10] sm:$0xff]  ;;  %v298_v10 = vld [vmem:[%s1513_s17 + $0x118] sm:$0xff] }
  0x29   : > { %1129 = vmatprep.subr.mxu0 %v433_v61  ;;  %1189 = vmatpush3.msra.mxu1 %v448_v11  ;;  %v371_v20 = vadd.f32 %v1518_v3, %v321_v12  ;;  %v404_v21 = vadd.f32 %v1518_v3, %v354_v13  ;;  %v386_v22 = vadd.f32 %v1518_v3, %v336_v14  ;;  %v280_v11 = vld [vmem:[%s1513_s17 + $0x88] sm:$0xff] }
  0x2a   : > { %1130 = vmatpush3.msra.mxu0 %v417_v62  ;;  %1190 = vmatprep.subr.mxu1 %v1407_v0  ;;  %v370_v24 = vadd.f32 %v1518_v3, %v320_v16  ;;  %v403_v25 = vadd.f32 %v1518_v3, %v353_v17  ;;  %v385_v26 = vadd.f32 %v1518_v3, %v335_v18 }
  0x2b   : > { %1131 = vmatprep.subr.mxu0 %v432_v63  ;;  %v414_v29 = vmul.f32 %v371_v20, %v371_v20  ;;  %v447_v30 = vmul.f32 %v404_v21, %v404_v21  ;;  %v429_v31 = vmul.f32 %v386_v22, %v386_v22  ;;  %v319_v32 = vmul.f32 %v1508_v2, %v269_v19  ;;  %v264_v19 = vld [vmem:[%s1513_s17 + $0x8] sm:$0xff]  ;;  %v297_v20 = vld [vmem:[%s1513_s17 + $0x110] sm:$0xff] }
  0x2c   : > { %1132 = vmatpush3.msra.mxu0 %v416_v7  ;;  %v413_v35 = vmul.f32 %v370_v24, %v370_v24  ;;  %v446_v36 = vmul.f32 %v403_v25, %v403_v25  ;;  %v428_v37 = vmul.f32 %v385_v26, %v385_v26  ;;  %v352_v38 = vmul.f32 %v1508_v2, %v302_v23  ;;  %v279_v24 = vld [vmem:[%s1513_s17 + $0x80] sm:$0xff] }
  0x2d   : > { %1133 = vmatprep.subr.mxu0 %v431_v8  ;;  %1191 = vmatpush3.msra.mxu1 %v447_v30  ;;  %v369_v39 = vadd.f32 %v1518_v3, %v319_v32  ;;  %v334_v40 = vmul.f32 %v1508_v2, %v284_v27  ;;  %v318_v41 = vmul.f32 %v1508_v2, %v268_v28  ;;  %v263_v25 = vld [vmem:[%s1513_s17] sm:$0xff] }
  0x2e   : > { %1134 = vmatpush3.msra.mxu0 %v415_v9  ;;  %1192 = vmatprep.subr.mxu1 %v1407_v0  ;;  %v402_v42 = vadd.f32 %v1518_v3, %v352_v38  ;;  %v351_v43 = vmul.f32 %v1508_v2, %v301_v33  ;;  %v333_v44 = vmul.f32 %v1508_v2, %v283_v34  ;;  %v296_v33 = vld [vmem:[%s1513_s17 + $0x108] sm:$0xff] }
  0x2f   : > { %1135 = vmatprep.subr.mxu0 %v430_v15  ;;  %1193 = vmatpush3.msra.mxu1 %v446_v36  ;;  %v412_v47 = vmul.f32 %v369_v39, %v369_v39  ;;  %v384_v48 = vadd.f32 %v1518_v3, %v334_v40  ;;  %v368_v49 = vadd.f32 %v1518_v3, %v318_v41 }
  0x30   : > { %1136 = vmatpush3.msra.mxu0 %v414_v29  ;;  %1194 = vmatprep.subr.mxu1 %v1407_v0  ;;  %v445_v51 = vmul.f32 %v402_v42, %v402_v42  ;;  %v401_v52 = vadd.f32 %v1518_v3, %v351_v43  ;;  %v383_v53 = vadd.f32 %v1518_v3, %v333_v44 }
  0x31   : > { %1137 = vmatprep.subr.mxu0 %v429_v31  ;;  %v427_v55 = vmul.f32 %v384_v48, %v384_v48  ;;  %v411_v56 = vmul.f32 %v368_v49, %v368_v49  ;;  %v317_v57 = vmul.f32 %v1508_v2, %v267_v45  ;;  %v350_v58 = vmul.f32 %v1508_v2, %v300_v46 }
  0x32   : > { %1138 = vmatpush3.msra.mxu0 %v413_v35  ;;  %1195 = vmatpush3.msra.mxu1 %v445_v51  ;;  %v444_v61 = vmul.f32 %v401_v52, %v401_v52  ;;  %v426_v62 = vmul.f32 %v383_v53, %v383_v53  ;;  %v332_v63 = vmul.f32 %v1508_v2, %v282_v50  ;;  %v449_v51 = vld [vmem:[%s1833_s3] sm:$0xff] }
  0x33   : > { %1139 = vmatprep.subr.mxu0 %v428_v37  ;;  %1196 = vmatprep.subr.mxu1 %v1407_v0  ;;  %v367_v1 = vadd.f32 %v1518_v3, %v317_v57  ;;  %v400_v4 = vadd.f32 %v1518_v3, %v350_v58  ;;  %v316_v5 = vmul.f32 %v1508_v2, %v266_v54  ;;  %v295_v37 = vld [vmem:[%s1513_s17 + $0x100] sm:$0xff]  ;;  %v451_v54 = vld [vmem:[%s1833_s3 + $0x10] sm:$0xff]  ;;  %v1094_v58 = vld [vmem:[%s1834_s4 + $0x28] sm:$0xff]  ;;  %s1119_s17 = sshll.u32 %s1470_s25, 5  ;;  %s955_s25 = scalar_lea.sflag [#allocation3], %s1745_s12 }
  0x34   : > { %1140 = vmatpush3.msra.mxu0 %v412_v47  ;;  %1197 = vmatpush3.msra.mxu1 %v444_v61  ;;  %v382_v7 = vadd.f32 %v1518_v3, %v332_v63  ;;  %v349_v8 = vmul.f32 %v1508_v2, %v299_v59  ;;  %v331_v9 = vmul.f32 %v1508_v2, %v281_v60  ;;  %v1101_v57 = vld [vmem:[%s1834_s4 + $0x50] sm:$0xff]  ;;  %v1100_v59 = vld [vmem:[%s1834_s4 + $0x48] sm:$0xff]  ;;  %v1093_v60 = vld [vmem:[%s1834_s4 + $0x20] sm:$0xff]  ;;  %s1754_s26 = scalar_lea.hbm %s1835_s5, %s1119_s17  ;;  %s1761_s9 = scalar_lea.hbm %s1836_s6, %s1119_s17 }
  0x35   : > { %1141 = vmatprep.subr.mxu0 %v427_v55  ;;  %1198 = vmatprep.subr.mxu1 %v1407_v0  ;;  %v410_v12 = vmul.f32 %v367_v1, %v367_v1  ;;  %v443_v13 = vmul.f32 %v400_v4, %v400_v4  ;;  %v366_v14 = vadd.f32 %v1518_v3, %v316_v5  ;;  %v1102_v55 = vld [vmem:[%s1834_s4 + $0x58] sm:$0xff]  ;;  %v1099_v61 = vld [vmem:[%s1834_s4 + $0x40] sm:$0xff] }
  0x36   : > { %1142 = vmatpush3.msra.mxu0 %v411_v56  ;;  %v425_v15 = vmul.f32 %v382_v7, %v382_v7  ;;  %v399_v16 = vadd.f32 %v1518_v3, %v349_v8  ;;  %v381_v17 = vadd.f32 %v1518_v3, %v331_v9  ;;  %v315_v18 = vmul.f32 %v1508_v2, %v265_v6  ;;  %v1095_v56 = vld [vmem:[%s1834_s4 + $0x30] sm:$0xff]  ;;  %v599_v9 = vld [vmem:[%s1834_s4 + $0x18] sm:$0xff] }
  0x37   : > { %1143 = vmatprep.subr.mxu0 %v426_v62  ;;  %1199 = vmatpush3.msra.mxu1 %v443_v13  ;;  %v409_v21 = vmul.f32 %v366_v14, %v366_v14  ;;  %v348_v22 = vmul.f32 %v1508_v2, %v298_v10  ;;  %v330_v23 = vmul.f32 %v1508_v2, %v280_v11  ;;  %v598_v10 = vld [vmem:[%s1834_s4 + $0x10] sm:$0xff]  ;;  %v597_v11 = vld [vmem:[%s1834_s4 + $0x8] sm:$0xff]  ;;  %v1107_v13 = vld [vmem:[%s1834_s4 + $0x78] sm:$0xff] }
  0x38   : > { %1144 = vmatpush3.msra.mxu0 %v410_v12  ;;  %1200 = vmatprep.subr.mxu1 %v1407_v0  ;;  %v442_v26 = vmul.f32 %v399_v16, %v399_v16  ;;  %v424_v27 = vmul.f32 %v381_v17, %v381_v17  ;;  %v365_v28 = vadd.f32 %v1518_v3, %v315_v18  ;;  %v596_v12 = vld [vmem:[%s1834_s4] sm:$0xff]  ;;  %v1106_v14 = vld [vmem:[%s1834_s4 + $0x70] sm:$0xff] }
  0x39   : > { %1145 = vmatprep.subr.mxu0 %v425_v15  ;;  %v398_v29 = vadd.f32 %v1518_v3, %v348_v22  ;;  %v380_v30 = vadd.f32 %v1518_v3, %v330_v23  ;;  %v314_v31 = vmul.f32 %v1508_v2, %v264_v19  ;;  %v347_v32 = vmul.f32 %v1508_v2, %v297_v20  ;;  %v1105_v15 = vld [vmem:[%s1834_s4 + $0x68] sm:$0xff]  ;;  %v1104_v16 = vld [vmem:[%s1834_s4 + $0x60] sm:$0xff] }
  0x3a   : > { %1146 = vmatpush3.msra.mxu0 %v409_v21  ;;  %1201 = vmatpush3.msra.mxu1 %v442_v26  ;;  %v408_v34 = vmul.f32 %v365_v28, %v365_v28  ;;  %v329_v35 = vmul.f32 %v1508_v2, %v279_v24  ;;  %v313_v36 = vmul.f32 %v1508_v2, %v263_v25 }
  0x3b   : > { %1147 = vmatprep.subr.mxu0 %v424_v27  ;;  %1202 = vmatprep.subr.mxu1 %v1407_v0  ;;  %v441_v38 = vmul.f32 %v398_v29, %v398_v29  ;;  %v423_v39 = vmul.f32 %v380_v30, %v380_v30  ;;  %v364_v40 = vadd.f32 %v1518_v3, %v314_v31 }
  0x3c   : > { %1148 = vmatpush3.msra.mxu0 %v408_v34  ;;  %v397_v41 = vadd.f32 %v1518_v3, %v347_v32  ;;  %v379_v42 = vadd.f32 %v1518_v3, %v329_v35  ;;  %v363_v43 = vadd.f32 %v1518_v3, %v313_v36  ;;  %v346_v44 = vmul.f32 %v1508_v2, %v296_v33 }
  0x3d   : > { %1203 = vmatpush3.msra.mxu1 %v441_v38  ;;  %1149 = vmatprep.subr.mxu0 %v423_v39  ;;  %v407_v45 = vmul.f32 %v364_v40, %v364_v40  ;;  %v345_v46 = vmul.f32 %v1508_v2, %v295_v37 }
  0x3e   : > { %1204 = vmatprep.subr.mxu1 %v1407_v0  ;;  %v440_v47 = vmul.f32 %v397_v41, %v397_v41  ;;  %v422_v48 = vmul.f32 %v379_v42, %v379_v42  ;;  %v406_v49 = vmul.f32 %v363_v43, %v363_v43  ;;  %v396_v50 = vadd.f32 %v1518_v3, %v346_v44 }
  0x3f   : > { %1150 = vmatpush3.msra.mxu0 %v407_v45  ;;  %v395_v52 = vadd.f32 %v1518_v3, %v345_v46  ;;  %v1096_v3 = vld [vmem:[%s1834_s4 + $0x38] sm:$0xff] }
  0x40   : > { %1205 = vmatpush3.msra.mxu1 %v440_v47  ;;  %1151 = vmatprep.subr.mxu0 %v422_v48  ;;  %v439_v53 = vmul.f32 %v396_v50, %v396_v50 }
  0x41   : > { %1206 = vmatprep.subr.mxu1 %v1407_v0  ;;  %1152 = vmatpush3.msra.mxu0 %v406_v49  ;;  %v438_v2 = vmul.f32 %v395_v52, %v395_v52 }
  0x42   : > { %1207 = vmatpush3.msra.mxu1 %v439_v53  ;;  %521 = vmatmul.mubr.f32.vlgmr.msra.gmra.mxu0 %v449_v51 }
  0x43   : > { %1208 = vmatprep.subr.mxu1 %v1407_v0  ;;  %1235 = vmatprep.subr.mxu0 %v1407_v0 }
  0x44   : > { %1209 = vmatpush3.msra.mxu1 %v438_v2  ;;  %1243 = vmatprep.mubr.msk.f32.mxu0 %vm1408_vm0, %v1407_v0 }
  0x45   : > { %1211 = vmatmul.mubr.msk.f32.vlgmr.msra.gmra.mxu1 %vm452_vm1, %v451_v54  ;;  %1213 = vmatprep.subr.mxu1 %v1407_v0 }
  0x46   : > { %1221 = vmatprep.mubr.msk.f32.mxu1 %vm1408_vm0, %v1407_v0  ;;  %1214 = vmatpush3.msra.mxu1 %v1096_v3 }
  0x47   : > { %1215 = vmatprep.subr.mxu1 %v1407_v0  ;;  %1236 = vmatpush3.msra.mxu0 %v1102_v55 }
  0x48   : > { %1216 = vmatpush3.msra.mxu1 %v1095_v56  ;;  %1237 = vmatprep.subr.mxu0 %v1407_v0 }
  0x49   : > { %1217 = vmatprep.subr.mxu1 %v1407_v0  ;;  %1238 = vmatpush3.msra.mxu0 %v1101_v57 }
  0x4a   : > { %1218 = vmatpush3.msra.mxu1 %v1094_v58  ;;  %1239 = vmatprep.subr.mxu0 %v1407_v0 }
  0x4b   : > { %1219 = vmatprep.subr.mxu1 %v1407_v0  ;;  %1240 = vmatpush3.msra.mxu0 %v1100_v59 }
  0x4c   : > { %1220 = vmatpush3.msra.mxu1 %v1093_v60  ;;  %1241 = vmatprep.subr.mxu0 %v1407_v0 }
  0x4d   : > { %1224 = vmatprep.subr.mxu1 %v1407_v0  ;;  %1242 = vmatpush3.msra.mxu0 %v1099_v61 }
 0x102   : > { %v1153_v62 = vpop.f32.mrf.mxu0 }
 0x104   : > { %v1154_v63 = vpop.f32.mrf.mxu0 }
 0x105   : > { %v1155_v1 = vadd.f32 %v1154_v63, %v1153_v62  ;;  %v592_v4 = vpop.f32.mrf.mxu1 }
 0x107   : > { %v593_v5 = vadd.f32 %v1155_v1, %v592_v4  ;;  %v1212_v6 = vpop.f32.mrf.mxu1 }
 0x109   : > { %v606_v7 = vrot.slane %v593_v5, 2  ;;  %v757_v8 = vrot.slane %v593_v5, 4  ;;  %v836_v17 = vrot.slane %v593_v5, 6 }
 0x10b   : > { %1222 = vmatmul.mubr.msk.f32.vlgmr.msra.gmra.mxu1 %vm607_vm2, %v606_v7  ;;  %1244 = vmatmul.mubr.msk.f32.vlgmr.msra.gmra.mxu0 %vm607_vm2, %v757_v8 }
 0x10c   : > { %1225 = vmatpush3.msra.mxu1 %v599_v9  ;;  %1232 = vmatprep.mubr.msk.f32.mxu1 %vm1408_vm0, %v1407_v0 }
 0x10d   : > { %1226 = vmatprep.subr.mxu1 %v1407_v0 }
 0x10e   : > { %1227 = vmatpush3.msra.mxu1 %v598_v10 }
 0x10f   : > { %1228 = vmatprep.subr.mxu1 %v1407_v0 }
 0x110   : > { %1229 = vmatpush3.msra.mxu1 %v597_v11 }
 0x111   : > { %1230 = vmatprep.subr.mxu1 %v1407_v0 }
 0x112   : > { %1231 = vmatpush3.msra.mxu1 %v596_v12 }
 0x113   : > { %1233 = vmatmul.mubr.msk.f32.vlgmr.msra.gmra.mxu1 %vm607_vm2, %v593_v5  ;;  %1246 = vmatprep.subr.mxu1 %v1407_v0 }
 0x114   : > { %1247 = vmatpush3.msra.mxu1 %v1107_v13  ;;  %1254 = vmatprep.mubr.msk.f32.mxu1 %vm1408_vm0, %v1407_v0 }
 0x115   : > { %1248 = vmatprep.subr.mxu1 %v1407_v0 }
 0x116   : > { %1249 = vmatpush3.msra.mxu1 %v1106_v14 }
 0x117   : > { %1250 = vmatprep.subr.mxu1 %v1407_v0 }
 0x118   : > { %1251 = vmatpush3.msra.mxu1 %v1105_v15 }
 0x119   : > { %1252 = vmatprep.subr.mxu1 %v1407_v0 }
 0x11a   : > { %1253 = vmatpush3.msra.mxu1 %v1104_v16 }
 0x11b   : > { %1255 = vmatmul.mubr.msk.f32.vlgmr.msra.gmra.mxu1 %vm607_vm2, %v836_v17 }
 0x1cb   : > { %v676_v18 = vpop.f32.mrf.mxu1  ;;  %v826_v19 = vpop.f32.mrf.mxu0 }
 0x1cd   : > { %v1223_v20 = vpop.f32.mrf.mxu1  ;;  %v1245_v21 = vpop.f32.mrf.mxu0 }
 0x1d3   : > { %v748_v22 = vpop.f32.mrf.mxu1 }
 0x1d4   : > { %v749_v24 = vadd.f32 %v748_v22, %v676_v18 }
 0x1d5   : > { %v1234_v23 = vpop.f32.mrf.mxu1 }
 0x1d6   : > { %v830_v25 = vadd.f32 %v826_v19, %v749_v24 }
 0x1db   : > { %v905_v26 = vpop.f32.mrf.mxu1 }
 0x1dc   : > { %v909_v27 = vadd.f32 %v905_v26, %v830_v25 }
 0x1dd   : > { %v1256_v28 = vpop.f32.mrf.mxu1 }
 0x1de   : > { %v929_v29 = vsel %vm928_vm3, %v909_v27, -inf  ;;  %v911_v30 = vsel %vm910_vm4, %v909_v27, -inf }
 0x1df   : > { %930 = vmax.xlane.f32.xlu0 %v929_v29  ;;  %912 = vmax.xlane.f32.xlu1 %v911_v30 }
 0x268   : > { %v931_v0 = vpop.xlane.xlu0 %930  ;;  %v913_v34 = vpop.xlane.xlu1 %912 }
 0x269   : > { %v932_v31 = vsub.f32 %v909_v27, %v931_v0  ;;  %v914_v35 = vsub.f32 %v909_v27, %v913_v34 }
 0x26b   : > { %v933_v32 = vmul.f32 1.442695, %v932_v31  ;;  %v915_v36 = vmul.f32 1.442695, %v914_v35 }
 0x26d   : > { %1307 = vpow2.f32 %v933_v32 }
 0x26e   : > { %1309 = vpow2.f32 %v915_v36 }
 0x27a   : > { %v1308_v33 = vpop.eup %1307 }
 0x27b   : > { %936 = vrot.lane.b32.xlu0 %v1308_v33, %s1409_s11  ;;  %v1310_v39 = vpop.eup %1309 }
 0x27c   : > { %v917_v40 = vsel %vm910_vm4, %v1310_v39, 0.0 }
 0x2ed   : > { %v937_v37 = vpop.permute.xlu0 %936 }
 0x2ee   : > { %v939_v38 = vsel %vm910_vm4, %v937_v37, 0.0 }
 0x2ef   : > { %940 = vadd.xlane.f32.xlu1 %v939_v38 }
 0x2f3   : > { %918 = vadd.xlane.f32.xlu1 %v917_v40 }
 0x378   : > { %v941_v41 = vpop.xlane.xlu1 %940 }
 0x379   : > { %1311 = vlog2.f32 %v941_v41 }
 0x37c   : > { %v919_v42 = vpop.xlane.xlu1 %918 }
 0x37d   : > { %1313 = vlog2.f32 %v919_v42 }
 0x386   : > { %v1312_v43 = vpop.eup %1311 }
 0x387   : > { %v943_v44 = vmul.f32 0.6931472, %v1312_v43 }
 0x389   : > { %v944_v45 = vadd.f32 %v943_v44, %v931_v0 }
 0x38a   : > { %v1314_v46 = vpop.eup %1313 }
 0x38b   : > { %v921_v47 = vmul.f32 0.6931472, %v1314_v46  ;;  %v945_v48 = vsub.f32 %v909_v27, %v944_v45 }
 0x38d   : > { %v922_v49 = vadd.f32 %v921_v47, %v913_v34  ;;  %947 = vrot.lane.b32.xlu1 %v945_v48, %s1409_s11  ;;  %s1410_s11 = smov [#allocation2]  }
 0x38e   : > { %s1319_s13 = sshll.u32 %s1410_s11, 4  ;;  %s1320_s13 = int_to_ptr.vmem [resolvable:$false] %s1319_s13 }
 0x38f   : > { %v923_v50 = vsub.f32 %v909_v27, %v922_v49  ;;  %s1321_s19 = scalar_lea.vmem %s1320_s13, 64  ;;  %p1322_p0 = scmp.lt.s32.totalorder %s1749_s16, %s1320_s13 }
 0x390   : > { %p1323_p1 = scmp.lt.s32.totalorder %s1321_s19, %s1315_s10 }
 0x391   : > { %925 = vst.msk [vmem:[%s248_s14] sm:$0x1] %vm924_vm5, %v923_v50 }
 0x392   : > { %927 = vst.msk [vmem:[%s255_s15 - $0x1] sm:$0x2] %vm926_vm6, %v923_v50  ;;  %p1324_p2 = por %p1323_p1, %p1322_p0 }
 0x394   : > { %p1325_p3 = pnand %p1324_p2, %p1318_p13 }
 0x3ff   : > { %v948_v51 = vpop.permute.xlu1 %947 }
 0x400   : > { %1109 = vst.msk [vmem:[%s248_s14 + $0x1] sm:$0x1] %vm924_vm5, %v948_v51 }
 0x401   : > { %1110 = vst.msk [vmem:[%s255_s15] sm:$0x2] %vm926_vm6, %v948_v51 }
 0x402   : > { %1328 = shalt.err (!%p1325_p3)
}
 0x403   : > { %s1329_s14 = scalar_lea.hbm %s1754_s26, 32  ;;  %s1333_s20 = scalar_lea.hbm %s1835_s5, 64 }
 0x404   : > { %p1330_p4 = scmp.ne.s32.totalorder %s1754_s26, %s1329_s14  ;;  %p1334_p9 = scmp.lt.s32.totalorder %s1754_s26, %s1835_s5 }
 0x405   : > { %p1335_p10 = scmp.lt.s32.totalorder %s1333_s20, %s1329_s14 }
 0x406   : > { %p1331_p7 = pnand %p1330_p4, %p1487_p5 }
 0x407   : > { %p1336_p11 = por %p1335_p10, %p1334_p9 }
 0x408   : > { %p1332_p8 = pneg %p1331_p7 }
 0x40a   : > { %p1337_p12 = pnand %p1336_p11, %p1332_p8 }
 0x40c   : > { %1340 = shalt.err (!%p1337_p12)
}
 0x40d   : > { %s1411_s10 = smov 16   ;;  %s1412_s11 = smov 1  }
 0x40e   : > { %1258 = dma.vmem_to_hbm [thread:$0]  (%p1487_p5), %s1749_s16, 32, %s1754_s26, %s955_s25, %s1411_s10, %s1411_s10, %s1412_s11  }
 0x40f   : > { %s960_s13 = scalar_lea.sflag [#allocation5], %s1745_s12  ;;  %s1341_s19 = scalar_lea.vmem %s1756_s18, 32 }
 0x410   : > { %p1342_p13 = scmp.ne.s32.totalorder %s1756_s18, %s1341_s19  ;;  %s1413_s14 = smov [#allocation4]  }
 0x411   : > { %s1345_s15 = sshll.u32 %s1413_s14, 4  ;;  %s1346_s15 = int_to_ptr.vmem [resolvable:$false] %s1345_s15 }
 0x412   : > { %p1343_p0 = pnand %p1342_p13, %p1487_p5  ;;  %s1347_s17 = scalar_lea.vmem %s1346_s15, 64 }
 0x413   : > { %p1348_p2 = scmp.lt.s32.totalorder %s1756_s18, %s1346_s15  ;;  %p1349_p3 = scmp.lt.s32.totalorder %s1347_s17, %s1341_s19 }
 0x414   : > { %p1344_p1 = pneg %p1343_p0 }
 0x415   : > { %p1350_p4 = por %p1349_p3, %p1348_p2 }
 0x417   : > { %p1351_p7 = pnand %p1350_p4, %p1344_p1 }
 0x419   : > { %1354 = shalt.err (!%p1351_p7)
}
 0x41a   : > { %s1355_s16 = scalar_lea.hbm %s1761_s9, 32  ;;  %s1359_s25 = scalar_lea.hbm %s1836_s6, 64 }
 0x41b   : > { %p1356_p8 = scmp.ne.s32.totalorder %s1761_s9, %s1355_s16  ;;  %p1360_p11 = scmp.lt.s32.totalorder %s1761_s9, %s1836_s6 }
 0x41c   : > { %p1361_p12 = scmp.lt.s32.totalorder %s1359_s25, %s1355_s16 }
 0x41d   : > { %p1357_p9 = pnand %p1356_p8, %p1487_p5 }
 0x41e   : > { %p1362_p13 = por %p1361_p12, %p1360_p11 }
 0x41f   : > { %p1358_p10 = pneg %p1357_p9 }
 0x421   : > { %p1363_p0 = pnand %p1362_p13, %p1358_p10 }
 0x423   : > { %1366 = shalt.err (!%p1363_p0)
}
 0x424   : > { %1259 = dma.vmem_to_hbm [thread:$0]  (%p1487_p5), %s1756_s18, 32, %s1761_s9, %s960_s13, %s1411_s10, %s1411_s10, %s1412_s11  }
 0x425 PF: > { %p1269_p1 = scmp.ge.s32.totalorder %s1405_s24, 2  ;;  %s1004_s29 = sand.u32 1, %s1393_s21  }
 0x426   : > { %s1005_s19 = scalar_lea.sflag [#allocation3], %s1004_s29 }
 0x427   : > { %p1263_p2 = pnand %p1269_p1, %p1491_p6 }
 0x429   : > { %p1264_p3 = pneg %p1263_p2 }
 0x42b   : > { %1384 = dma.done.wait (%p1264_p3), %s1005_s19, 32  }
 0x42c   : > { %1386 = vsyncadd (%p1264_p3), %s1005_s19, 4294967264  ;;  %s1014_s14 = scalar_lea.sflag [#allocation5], %s1004_s29 }
 0x42d   : > { %1388 = dma.done.wait (%p1264_p3), %s1014_s14, 32  }
 0x42e   : > { %1390 = vsyncadd (%p1264_p3), %s1014_s14, 4294967264  ;;  %p20_p5 = scmp.ge.s32.totalorder %s1474_s27, 4   ;;  %s1839_s21 = smov %s1397_s22 }
 0x42f   : > { %s1840_s22 = smov %s1401_s23  ;;  %s1841_s23 = smov %s1485_s30 }
 0x430   : > { %s1842_s24 = smov %s1474_s27  ;;  %22 = sbr.rel (!%p20_p5) target bundleno = 5 (0x5), region = 97 }
 0x435   :  { %1019 = vsyncpa [#allocation3], 1 }
 0x436   :  { %1021 = vsyncpa [#allocation3 + $0x1], 1 }
 0x437   :  { %1022 = vsyncpa [#allocation5], 1 }
 0x438   :  { %1024 = vsyncpa [#allocation5 + $0x1], 1 }

</bundles_post_ra>
